<compile_context>
chip_gen: v5e
topology: v5e:2x2
jax: 0.10.0
libtpu: 0.0.40
codegen_flags: <defaults>
</compile_context>

<pallas_src>
import functools
import math

import jax
import jax.numpy as jnp
from jax.experimental import pallas as pl
from jax.experimental.pallas import tpu as pltpu


# ------------------------------ shared math -------------------------------- #

def _layer_norm(x, w, b, eps=1e-5):
    mu = jnp.mean(x, axis=-1, keepdims=True)
    var = jnp.mean(jnp.square(x - mu), axis=-1, keepdims=True)
    return (x - mu) * jax.lax.rsqrt(var + eps) * w + b


def _mm(x, w):
    """Matmul with bf16 operands, f32 accumulation (MXU-native)."""
    return jnp.dot(x.astype(jnp.bfloat16), w.astype(jnp.bfloat16),
                   preferred_element_type=jnp.float32)


def cross_attn_constant(params):
    """Cross-attention output is a per-layer constant (memory is x-independent)."""
    # 0 encoder layers -> memory = encoder_norm(zeros) (same vector at every position)
    mem = _layer_norm(jnp.zeros_like(params["enc_norm_b"]),
                      params["enc_norm_w"], params["enc_norm_b"])          # (1, D)
    # identical memory rows + no memory mask -> uniform softmax -> attn out = V row
    v = jnp.einsum("xd,lde->lxe", mem, params["w_vc_t"]) + params["b_vc"]   # (L,1,D)
    cross = jnp.einsum("lxd,lde->lxe", v, params["w_oc_t"]) + params["b_oc"]
    return cross.astype(jnp.float32)                                        # (L,1,D)


# ----------------------------- Pallas kernel ------------------------------- #

def gpt_layer_kernel(num_heads,
                     x_ref,
                     w_in_ref, b_in_ref, w_o_ref, b_o_ref,
                     ln1_w_ref, ln1_b_ref,
                     cross_ref, ln2_w_ref, ln2_b_ref,
                     w1_ref, b1_ref, w2_ref, b2_ref,
                     ln3_w_ref, ln3_b_ref,
                     lnf_w_ref, lnf_b_ref,
                     w_lm_ref, b_lm_ref,
                     out_ref,
                     x_scr):
    """One grid step = (one batch element) x (one decoder layer)."""
    l = pl.program_id(1)
    num_l = pl.num_programs(1)

    S, D = x_scr.shape
    H = num_heads
    dh = D // H
    scale = 1.0 / math.sqrt(dh)

    # carried activation: load the embedding block at the first layer step
    @pl.when(l == 0)
    def _():
        x_scr[...] = x_ref[0]

    x = x_scr[...]                                         # (S, D) f32

    # -------- decoder self-attention (no causal mask, as in the PyTorch code) -----
    qkv = _mm(x, w_in_ref[0]) + b_in_ref[0]                # (S, 3D) f32
    heads = []
    for h in range(H):                                     # small static head loop
        q = qkv[:, h * dh:(h + 1) * dh]
        k = qkv[:, D + h * dh:D + (h + 1) * dh]
        v = qkv[:, 2 * D + h * dh:2 * D + (h + 1) * dh]
        # contract the head dim of both operands -> no explicit k.T transpose
        s = jax.lax.dot_general(q, k, (((1,), (1,)), ((), ())),
                                preferred_element_type=jnp.float32) * scale
        p = jax.nn.softmax(s, axis=-1)                     # f32 softmax
        heads.append(jnp.dot(p, v, preferred_element_type=jnp.float32))
    attn = jnp.concatenate(heads, axis=-1)                 # (S, D)
    attn = _mm(attn, w_o_ref[0]) + b_o_ref[0]
    x = _layer_norm(x + attn, ln1_w_ref[0], ln1_b_ref[0])

    # -------- cross-attention vs. constant encoder memory (precomputed) ----------
    x = _layer_norm(x + cross_ref[0], ln2_w_ref[0], ln2_b_ref[0])

    # -------- feed-forward (ReLU) --------
    hdn = jnp.maximum(_mm(x, w1_ref[0]) + b1_ref[0], 0.0)  # (S, F)
    ff = _mm(hdn, w2_ref[0]) + b2_ref[0]
    x = _layer_norm(x + ff, ln3_w_ref[0], ln3_b_ref[0])

    x_scr[...] = x

    # -------- final decoder norm + lm head on the last layer step --------
    @pl.when(l == num_l - 1)
    def _():
        xf = _layer_norm(x, lnf_w_ref[...], lnf_b_ref[...])
        logits = _mm(xf, w_lm_ref[...]) + b_lm_ref[...]    # (S, V) f32, lane-dense
        out_ref[0] = logits


def gpt_forward_pallas(x_emb, params, num_layers, num_heads):
    B, S, D = x_emb.shape
    V = params["w_lm_t"].shape[1]
    L = num_layers

    cross_c = cross_attn_constant(params)                  # (L, 1, D) f32

    # per-layer weights, streamed one layer per grid step
    per_layer = [
        params["w_in_t"], params["b_in"], params["w_o_t"], params["b_o"],
        params["ln1_w"], params["ln1_b"],
        cross_c, params["ln2_w"], params["ln2_b"],
        params["w1_t"], params["b1"], params["w2_t"], params["b2"],
        params["ln3_w"], params["ln3_b"],
    ]
    # small constants resident across the whole grid (final norm + lm head)
    resident = [params["lnf_w"], params["lnf_b"], params["w_lm_t"], params["b_lm"]]

    def layer_spec(arr):       # (L, a, b) -> block (1, a, b) indexed by l
        return pl.BlockSpec((1,) + arr.shape[1:], lambda b, l: (l, 0, 0))

    def const_spec(arr):       # 2-D constant, same block every step (no re-DMA)
        return pl.BlockSpec(arr.shape, lambda b, l: (0, 0))

    in_specs = ([pl.BlockSpec((1, S, D), lambda b, l: (b, 0, 0))]
                + [layer_spec(a) for a in per_layer]
                + [const_spec(a) for a in resident])
    out_spec = pl.BlockSpec((1, S, V), lambda b, l: (b, 0, 0))

    kernel = functools.partial(gpt_layer_kernel, num_heads)

    return pl.pallas_call(
        kernel,
        out_shape=jax.ShapeDtypeStruct((B, S, V), jnp.float32),
        grid_spec=pltpu.PrefetchScalarGridSpec(
            num_scalar_prefetch=0,
            grid=(B, L),                               # batch parallel, layers streamed
            in_specs=in_specs,
            out_specs=out_spec,
            scratch_shapes=[pltpu.VMEM((S, D), jnp.float32)],   # carried activation
        ),
        compiler_params=pltpu.CompilerParams(
            dimension_semantics=("parallel", "arbitrary"),
            vmem_limit_bytes=48 << 20,                 # headroom vs v7x 64 MiB physical
        ),
    )(x_emb, *per_layer, *resident)


# --------------------------- parameter creation ----------------------------- #

def init_params(key, vocab_size, d_model, block_size, num_layers, d_ff=2048):
    D, L, F, V = d_model, num_layers, d_ff, vocab_size
    keys = iter(jax.random.split(key, 64))
    bf = jnp.bfloat16

    def nrm(shape, s=0.02):
        return (s * jax.random.normal(next(keys), shape)).astype(jnp.float32)

    p = {
        "tok_emb": nrm((V, D), 1.0),
        "pos_emb": nrm((block_size, D), 1.0),
        # self-attn (weights stored transposed for x @ W; big matmul weights in bf16)
        "w_in_t": nrm((L, D, 3 * D)).astype(bf), "b_in": nrm((L, 1, 3 * D)),
        "w_o_t": nrm((L, D, D)).astype(bf),      "b_o": nrm((L, 1, D)),
        "ln1_w": 1.0 + nrm((L, 1, D)),           "ln1_b": nrm((L, 1, D)),
        # cross-attn pieces (folded into a per-layer constant in the wrapper)
        "enc_norm_w": 1.0 + nrm((1, D)),         "enc_norm_b": nrm((1, D)),
        "w_vc_t": nrm((L, D, D)),                "b_vc": nrm((L, 1, D)),
        "w_oc_t": nrm((L, D, D)),                "b_oc": nrm((L, 1, D)),
        "ln2_w": 1.0 + nrm((L, 1, D)),           "ln2_b": nrm((L, 1, D)),
        # FFN
        "w1_t": nrm((L, D, F)).astype(bf),       "b1": nrm((L, 1, F)),
        "w2_t": nrm((L, F, D)).astype(bf),       "b2": nrm((L, 1, D)),
        "ln3_w": 1.0 + nrm((L, 1, D)),           "ln3_b": nrm((L, 1, D)),
        # final decoder norm
        "lnf_w": 1.0 + nrm((1, D)),              "lnf_b": nrm((1, D)),
        # lm head
        "w_lm_t": nrm((D, V)).astype(bf),        "b_lm": nrm((1, V)),
    }
    return p


# ------------------------- pure-JAX reference check ------------------------- #

def gpt_forward_ref(x_emb, params, num_layers, num_heads):
    B, S, D = x_emb.shape
    H = num_heads
    dh = D // H
    cross_c = cross_attn_constant(params)                   # (L,1,D)

    x = x_emb
    for l in range(num_layers):
        qkv = _mm(x, params["w_in_t"][l]) + params["b_in"][l]        # (B,S,3D)
        q = qkv[..., :D].reshape(B, S, H, dh)
        k = qkv[..., D:2 * D].reshape(B, S, H, dh)
        v = qkv[..., 2 * D:].reshape(B, S, H, dh)
        s = jnp.einsum("bqhd,bkhd->bhqk", q, k,
                       preferred_element_type=jnp.float32) / math.sqrt(dh)
        p = jax.nn.softmax(s, axis=-1)
        o = jnp.einsum("bhqk,bkhd->bqhd", p, v,
                       preferred_element_type=jnp.float32).reshape(B, S, D)
        attn = _mm(o, params["w_o_t"][l]) + params["b_o"][l]
        x = _layer_norm(x + attn, params["ln1_w"][l], params["ln1_b"][l])

        x = _layer_norm(x + cross_c[l], params["ln2_w"][l], params["ln2_b"][l])

        h = jnp.maximum(_mm(x, params["w1_t"][l]) + params["b1"][l], 0.0)
        ff = _mm(h, params["w2_t"][l]) + params["b2"][l]
        x = _layer_norm(x + ff, params["ln3_w"][l], params["ln3_b"][l])

    x = _layer_norm(x, params["lnf_w"], params["lnf_b"])
    return _mm(x, params["w_lm_t"]) + params["b_lm"]


# ---------------------------------- main ------------------------------------ #

if __name__ == "__main__":
    vocab_size = 128
    output_dim = 32      # d_model
    block_size = 16
    num_heads = 4
    num_layers = 2
    batch, seq = 2, 8

    key = jax.random.PRNGKey(0)
    pkey, ikey = jax.random.split(key)
    params = init_params(pkey, vocab_size, output_dim, block_size, num_layers)

    # token ids (B, S)
    inputs = jax.random.randint(ikey, (batch, seq), 0, vocab_size)

    # embedding lookups (gather) kept as JAX glue
    tok = params["tok_emb"][inputs]                     # (B, S, D)
    pos = params["pos_emb"][jnp.arange(seq)]            # (S, D)
    x_emb = (tok + pos[None, :, :]).astype(jnp.float32)

    logits = gpt_forward_pallas(x_emb, params, num_layers, num_heads)
    logits = jax.block_until_ready(logits)

    ref = jax.block_until_ready(gpt_forward_ref(x_emb, params, num_layers, num_heads))

    assert logits.shape == (batch, seq, vocab_size)
    max_err = float(jnp.max(jnp.abs(logits - ref)))
    if max_err > 1e-2:
        raise AssertionError(f"Pallas vs reference mismatch: max_err={max_err}")
    print("KERNEL_OK")
</pallas_src>

<mosaic_0001>
module attributes {stable_mosaic.version = 11 : i64} {
  func.func @gpt_layer_kernel(%arg0: i32, %arg1: i32, %arg2: memref<1x8x32xf32, #tpu.memory_space<vmem>>, %arg3: memref<1x32x96xbf16, #tpu.memory_space<vmem>>, %arg4: memref<1x1x96xf32, #tpu.memory_space<vmem>>, %arg5: memref<1x32x32xbf16, #tpu.memory_space<vmem>>, %arg6: memref<1x1x32xf32, #tpu.memory_space<vmem>>, %arg7: memref<1x1x32xf32, #tpu.memory_space<vmem>>, %arg8: memref<1x1x32xf32, #tpu.memory_space<vmem>>, %arg9: memref<1x1x32xf32, #tpu.memory_space<vmem>>, %arg10: memref<1x1x32xf32, #tpu.memory_space<vmem>>, %arg11: memref<1x1x32xf32, #tpu.memory_space<vmem>>, %arg12: memref<1x32x2048xbf16, #tpu.memory_space<vmem>>, %arg13: memref<1x1x2048xf32, #tpu.memory_space<vmem>>, %arg14: memref<1x2048x32xbf16, #tpu.memory_space<vmem>>, %arg15: memref<1x1x32xf32, #tpu.memory_space<vmem>>, %arg16: memref<1x1x32xf32, #tpu.memory_space<vmem>>, %arg17: memref<1x1x32xf32, #tpu.memory_space<vmem>>, %arg18: memref<1x32xf32, #tpu.memory_space<vmem>>, %arg19: memref<1x32xf32, #tpu.memory_space<vmem>>, %arg20: memref<32x128xbf16, #tpu.memory_space<vmem>>, %arg21: memref<1x128xf32, #tpu.memory_space<vmem>>, %arg22: memref<1x8x128xf32, #tpu.memory_space<vmem>>, %arg23: memref<8x32xf32, #tpu.memory_space<vmem>>) attributes {dimension_semantics = [#tpu.dimension_semantics<parallel>, #tpu.dimension_semantics<arbitrary>], iteration_bounds = array<i64: 2, 2>, scalar_prefetch = 0 : i64, scratch_operands = 1 : i64, tpu.core_type = #tpu.core_type<tc>, window_params = [{transform_indices = @transform_0, window_bounds = array<i64: 1, 8, 32>}, {transform_indices = @transform_1, window_bounds = array<i64: 1, 32, 96>}, {transform_indices = @transform_2, window_bounds = array<i64: 1, 1, 96>}, {transform_indices = @transform_3, window_bounds = array<i64: 1, 32, 32>}, {transform_indices = @transform_4, window_bounds = array<i64: 1, 1, 32>}, {transform_indices = @transform_5, window_bounds = array<i64: 1, 1, 32>}, {transform_indices = @transform_6, window_bounds = array<i64: 1, 1, 32>}, {transform_indices = @transform_7, window_bounds = array<i64: 1, 1, 32>}, {transform_indices = @transform_8, window_bounds = array<i64: 1, 1, 32>}, {transform_indices = @transform_9, window_bounds = array<i64: 1, 1, 32>}, {transform_indices = @transform_10, window_bounds = array<i64: 1, 32, 2048>}, {transform_indices = @transform_11, window_bounds = array<i64: 1, 1, 2048>}, {transform_indices = @transform_12, window_bounds = array<i64: 1, 2048, 32>}, {transform_indices = @transform_13, window_bounds = array<i64: 1, 1, 32>}, {transform_indices = @transform_14, window_bounds = array<i64: 1, 1, 32>}, {transform_indices = @transform_15, window_bounds = array<i64: 1, 1, 32>}, {pipeline_mode = #tpu.pipeline_mode<synchronous>, transform_indices = @transform_16, window_bounds = array<i64: 1, 32>}, {pipeline_mode = #tpu.pipeline_mode<synchronous>, transform_indices = @transform_17, window_bounds = array<i64: 1, 32>}, {pipeline_mode = #tpu.pipeline_mode<synchronous>, transform_indices = @transform_18, window_bounds = array<i64: 32, 128>}, {pipeline_mode = #tpu.pipeline_mode<synchronous>, transform_indices = @transform_19, window_bounds = array<i64: 1, 128>}, {transform_indices = @transform_20, window_bounds = array<i64: 1, 8, 128>}]} {
    %c0_i32 = arith.constant 0 : i32
    %0 = arith.cmpi eq, %arg1, %c0_i32 : i32
    %1 = arith.extui %0 : i1 to i32
    %c0_i32_0 = arith.constant 0 : i32
    %2 = arith.cmpi ne, %1, %c0_i32_0 : i32
    scf.if %2 {
      %c0_93 = arith.constant 0 : index
      %c0_94 = arith.constant 0 : index
      %c0_95 = arith.constant 0 : index
      %199 = vector.load %arg2[%c0_93, %c0_94, %c0_95] : memref<1x8x32xf32, #tpu.memory_space<vmem>>, vector<1x8x32xf32>
      %200 = vector.shape_cast %199 : vector<1x8x32xf32> to vector<8x32xf32>
      %c0_96 = arith.constant 0 : index
      %c0_97 = arith.constant 0 : index
      %201 = vector.load %arg23[%c0_96, %c0_97] : memref<8x32xf32, #tpu.memory_space<vmem>>, vector<8x32xf32>
      tpu.vector_store %arg23[%c0_96, %c0_97], %200 {strides = array<i32>} : memref<8x32xf32, #tpu.memory_space<vmem>>, vector<8x32xf32>,
    } else {
    }
    %c0 = arith.constant 0 : index
    %c0_1 = arith.constant 0 : index
    %3 = vector.load %arg23[%c0, %c0_1] : memref<8x32xf32, #tpu.memory_space<vmem>>, vector<8x32xf32>
    %c0_2 = arith.constant 0 : index
    %c0_3 = arith.constant 0 : index
    %c0_4 = arith.constant 0 : index
    %4 = vector.load %arg3[%c0_2, %c0_3, %c0_4] : memref<1x32x96xbf16, #tpu.memory_space<vmem>>, vector<1x32x96xbf16>
    %5 = vector.shape_cast %4 : vector<1x32x96xbf16> to vector<32x96xbf16>
    %6 = arith.truncf %3 : vector<8x32xf32> to vector<8x32xbf16>
    %cst = arith.constant dense<0.000000e+00> : vector<8x96xf32>
    %7 = tpu.matmul %6, %5, %cst {dimension_numbers = #tpu.dot_dimension_numbers<[1], [0], [0], [1], [0, 0, 1, 1], [], []>} : vector<8x32xbf16>, vector<32x96xbf16>, vector<8x96xf32> -> vector<8x96xf32>
    %c0_5 = arith.constant 0 : index
    %c0_6 = arith.constant 0 : index
    %c0_7 = arith.constant 0 : index
    %8 = vector.load %arg4[%c0_5, %c0_6, %c0_7] : memref<1x1x96xf32, #tpu.memory_space<vmem>>, vector<1x1x96xf32>
    %9 = vector.shape_cast %8 : vector<1x1x96xf32> to vector<1x96xf32>
    %10 = vector.broadcast %9 : vector<1x96xf32> to vector<8x96xf32>
    %11 = arith.addf %7, %10 : vector<8x96xf32>
    %12 = vector.extract_strided_slice %11 {offsets = [0, 0], sizes = [8, 8], strides = [1, 1]} : vector<8x96xf32> to vector<8x8xf32>
    %13 = vector.extract_strided_slice %11 {offsets = [0, 32], sizes = [8, 8], strides = [1, 1]} : vector<8x96xf32> to vector<8x8xf32>
    %14 = vector.extract_strided_slice %11 {offsets = [0, 64], sizes = [8, 8], strides = [1, 1]} : vector<8x96xf32> to vector<8x8xf32>
    %cst_8 = arith.constant dense<0.000000e+00> : vector<8x8xf32>
    %15 = tpu.matmul %12, %13, %cst_8 {dimension_numbers = #tpu.dot_dimension_numbers<[1], [1], [0], [0], [0, 0, 1, 0], [], []>} : vector<8x8xf32>, vector<8x8xf32>, vector<8x8xf32> -> vector<8x8xf32>
    %cst_9 = arith.constant 0.353553385 : f32
    %16 = vector.broadcast %cst_9 : f32 to vector<8x8xf32>
    %17 = arith.mulf %15, %16 : vector<8x8xf32>
    %cst_10 = arith.constant dense<0xFF800000> : vector<8xf32>
    %18 = vector.multi_reduction <maximumf>, %17, %cst_10 [1] : vector<8x8xf32> to vector<8xf32>
    %cst_11 = arith.constant 0xFF800000 : f32
    %19 = vector.broadcast %cst_11 : f32 to vector<8xf32>
    %20 = arith.maximumf %19, %18 : vector<8xf32>
    %21 = vector.shape_cast %20 : vector<8xf32> to vector<8x1xf32>
    %22 = vector.broadcast %21 : vector<8x1xf32> to vector<8x8xf32>
    %23 = arith.subf %17, %22 : vector<8x8xf32>
    %24 = math.exp %23 : vector<8x8xf32>
    %cst_12 = arith.constant dense<0.000000e+00> : vector<8xf32>
    %25 = vector.multi_reduction <add>, %24, %cst_12 [1] : vector<8x8xf32> to vector<8xf32>
    %26 = vector.shape_cast %25 : vector<8xf32> to vector<8x1xf32>
    %27 = vector.broadcast %26 : vector<8x1xf32> to vector<8x8xf32>
    %28 = arith.divf %24, %27 : vector<8x8xf32>
    %cst_13 = arith.constant dense<0.000000e+00> : vector<8x8xf32>
    %29 = tpu.matmul %28, %14, %cst_13 {dimension_numbers = #tpu.dot_dimension_numbers<[1], [0], [0], [1], [0, 0, 1, 1], [], []>} : vector<8x8xf32>, vector<8x8xf32>, vector<8x8xf32> -> vector<8x8xf32>
    %30 = vector.extract_strided_slice %11 {offsets = [0, 8], sizes = [8, 8], strides = [1, 1]} : vector<8x96xf32> to vector<8x8xf32>
    %31 = vector.extract_strided_slice %11 {offsets = [0, 40], sizes = [8, 8], strides = [1, 1]} : vector<8x96xf32> to vector<8x8xf32>
    %32 = vector.extract_strided_slice %11 {offsets = [0, 72], sizes = [8, 8], strides = [1, 1]} : vector<8x96xf32> to vector<8x8xf32>
    %cst_14 = arith.constant dense<0.000000e+00> : vector<8x8xf32>
    %33 = tpu.matmul %30, %31, %cst_14 {dimension_numbers = #tpu.dot_dimension_numbers<[1], [1], [0], [0], [0, 0, 1, 0], [], []>} : vector<8x8xf32>, vector<8x8xf32>, vector<8x8xf32> -> vector<8x8xf32>
    %cst_15 = arith.constant 0.353553385 : f32
    %34 = vector.broadcast %cst_15 : f32 to vector<8x8xf32>
    %35 = arith.mulf %33, %34 : vector<8x8xf32>
    %cst_16 = arith.constant dense<0xFF800000> : vector<8xf32>
    %36 = vector.multi_reduction <maximumf>, %35, %cst_16 [1] : vector<8x8xf32> to vector<8xf32>
    %cst_17 = arith.constant 0xFF800000 : f32
    %37 = vector.broadcast %cst_17 : f32 to vector<8xf32>
    %38 = arith.maximumf %37, %36 : vector<8xf32>
    %39 = vector.shape_cast %38 : vector<8xf32> to vector<8x1xf32>
    %40 = vector.broadcast %39 : vector<8x1xf32> to vector<8x8xf32>
    %41 = arith.subf %35, %40 : vector<8x8xf32>
    %42 = math.exp %41 : vector<8x8xf32>
    %cst_18 = arith.constant dense<0.000000e+00> : vector<8xf32>
    %43 = vector.multi_reduction <add>, %42, %cst_18 [1] : vector<8x8xf32> to vector<8xf32>
    %44 = vector.shape_cast %43 : vector<8xf32> to vector<8x1xf32>
    %45 = vector.broadcast %44 : vector<8x1xf32> to vector<8x8xf32>
    %46 = arith.divf %42, %45 : vector<8x8xf32>
    %cst_19 = arith.constant dense<0.000000e+00> : vector<8x8xf32>
    %47 = tpu.matmul %46, %32, %cst_19 {dimension_numbers = #tpu.dot_dimension_numbers<[1], [0], [0], [1], [0, 0, 1, 1], [], []>} : vector<8x8xf32>, vector<8x8xf32>, vector<8x8xf32> -> vector<8x8xf32>
    %48 = vector.extract_strided_slice %11 {offsets = [0, 16], sizes = [8, 8], strides = [1, 1]} : vector<8x96xf32> to vector<8x8xf32>
    %49 = vector.extract_strided_slice %11 {offsets = [0, 48], sizes = [8, 8], strides = [1, 1]} : vector<8x96xf32> to vector<8x8xf32>
    %50 = vector.extract_strided_slice %11 {offsets = [0, 80], sizes = [8, 8], strides = [1, 1]} : vector<8x96xf32> to vector<8x8xf32>
    %cst_20 = arith.constant dense<0.000000e+00> : vector<8x8xf32>
    %51 = tpu.matmul %48, %49, %cst_20 {dimension_numbers = #tpu.dot_dimension_numbers<[1], [1], [0], [0], [0, 0, 1, 0], [], []>} : vector<8x8xf32>, vector<8x8xf32>, vector<8x8xf32> -> vector<8x8xf32>
    %cst_21 = arith.constant 0.353553385 : f32
    %52 = vector.broadcast %cst_21 : f32 to vector<8x8xf32>
    %53 = arith.mulf %51, %52 : vector<8x8xf32>
    %cst_22 = arith.constant dense<0xFF800000> : vector<8xf32>
    %54 = vector.multi_reduction <maximumf>, %53, %cst_22 [1] : vector<8x8xf32> to vector<8xf32>
    %cst_23 = arith.constant 0xFF800000 : f32
    %55 = vector.broadcast %cst_23 : f32 to vector<8xf32>
    %56 = arith.maximumf %55, %54 : vector<8xf32>
    %57 = vector.shape_cast %56 : vector<8xf32> to vector<8x1xf32>
    %58 = vector.broadcast %57 : vector<8x1xf32> to vector<8x8xf32>
    %59 = arith.subf %53, %58 : vector<8x8xf32>
    %60 = math.exp %59 : vector<8x8xf32>
    %cst_24 = arith.constant dense<0.000000e+00> : vector<8xf32>
    %61 = vector.multi_reduction <add>, %60, %cst_24 [1] : vector<8x8xf32> to vector<8xf32>
    %62 = vector.shape_cast %61 : vector<8xf32> to vector<8x1xf32>
    %63 = vector.broadcast %62 : vector<8x1xf32> to vector<8x8xf32>
    %64 = arith.divf %60, %63 : vector<8x8xf32>
    %cst_25 = arith.constant dense<0.000000e+00> : vector<8x8xf32>
    %65 = tpu.matmul %64, %50, %cst_25 {dimension_numbers = #tpu.dot_dimension_numbers<[1], [0], [0], [1], [0, 0, 1, 1], [], []>} : vector<8x8xf32>, vector<8x8xf32>, vector<8x8xf32> -> vector<8x8xf32>
    %66 = vector.extract_strided_slice %11 {offsets = [0, 24], sizes = [8, 8], strides = [1, 1]} : vector<8x96xf32> to vector<8x8xf32>
    %67 = vector.extract_strided_slice %11 {offsets = [0, 56], sizes = [8, 8], strides = [1, 1]} : vector<8x96xf32> to vector<8x8xf32>
    %68 = vector.extract_strided_slice %11 {offsets = [0, 88], sizes = [8, 8], strides = [1, 1]} : vector<8x96xf32> to vector<8x8xf32>
    %cst_26 = arith.constant dense<0.000000e+00> : vector<8x8xf32>
    %69 = tpu.matmul %66, %67, %cst_26 {dimension_numbers = #tpu.dot_dimension_numbers<[1], [1], [0], [0], [0, 0, 1, 0], [], []>} : vector<8x8xf32>, vector<8x8xf32>, vector<8x8xf32> -> vector<8x8xf32>
    %cst_27 = arith.constant 0.353553385 : f32
    %70 = vector.broadcast %cst_27 : f32 to vector<8x8xf32>
    %71 = arith.mulf %69, %70 : vector<8x8xf32>
    %cst_28 = arith.constant dense<0xFF800000> : vector<8xf32>
    %72 = vector.multi_reduction <maximumf>, %71, %cst_28 [1] : vector<8x8xf32> to vector<8xf32>
    %cst_29 = arith.constant 0xFF800000 : f32
    %73 = vector.broadcast %cst_29 : f32 to vector<8xf32>
    %74 = arith.maximumf %73, %72 : vector<8xf32>
    %75 = vector.shape_cast %74 : vector<8xf32> to vector<8x1xf32>
    %76 = vector.broadcast %75 : vector<8x1xf32> to vector<8x8xf32>
    %77 = arith.subf %71, %76 : vector<8x8xf32>
    %78 = math.exp %77 : vector<8x8xf32>
    %cst_30 = arith.constant dense<0.000000e+00> : vector<8xf32>
    %79 = vector.multi_reduction <add>, %78, %cst_30 [1] : vector<8x8xf32> to vector<8xf32>
    %80 = vector.shape_cast %79 : vector<8xf32> to vector<8x1xf32>
    %81 = vector.broadcast %80 : vector<8x1xf32> to vector<8x8xf32>
    %82 = arith.divf %78, %81 : vector<8x8xf32>
    %cst_31 = arith.constant dense<0.000000e+00> : vector<8x8xf32>
    %83 = tpu.matmul %82, %68, %cst_31 {dimension_numbers = #tpu.dot_dimension_numbers<[1], [0], [0], [1], [0, 0, 1, 1], [], []>} : vector<8x8xf32>, vector<8x8xf32>, vector<8x8xf32> -> vector<8x8xf32>
    %84 = tpu.concatenate %29, %47, %65, %83 in 1 : vector<8x8xf32>, vector<8x8xf32>, vector<8x8xf32>, vector<8x8xf32> -> vector<8x32xf32>
    %c0_32 = arith.constant 0 : index
    %c0_33 = arith.constant 0 : index
    %c0_34 = arith.constant 0 : index
    %85 = vector.load %arg5[%c0_32, %c0_33, %c0_34] : memref<1x32x32xbf16, #tpu.memory_space<vmem>>, vector<1x32x32xbf16>
    %86 = vector.shape_cast %85 : vector<1x32x32xbf16> to vector<32x32xbf16>
    %87 = arith.truncf %84 : vector<8x32xf32> to vector<8x32xbf16>
    %cst_35 = arith.constant dense<0.000000e+00> : vector<8x32xf32>
    %88 = tpu.matmul %87, %86, %cst_35 {dimension_numbers = #tpu.dot_dimension_numbers<[1], [0], [0], [1], [0, 0, 1, 1], [], []>} : vector<8x32xbf16>, vector<32x32xbf16>, vector<8x32xf32> -> vector<8x32xf32>
    %c0_36 = arith.constant 0 : index
    %c0_37 = arith.constant 0 : index
    %c0_38 = arith.constant 0 : index
    %89 = vector.load %arg6[%c0_36, %c0_37, %c0_38] : memref<1x1x32xf32, #tpu.memory_space<vmem>>, vector<1x1x32xf32>
    %90 = vector.shape_cast %89 : vector<1x1x32xf32> to vector<1x32xf32>
    %91 = vector.broadcast %90 : vector<1x32xf32> to vector<8x32xf32>
    %92 = arith.addf %88, %91 : vector<8x32xf32>
    %93 = arith.addf %3, %92 : vector<8x32xf32>
    %c0_39 = arith.constant 0 : index
    %c0_40 = arith.constant 0 : index
    %c0_41 = arith.constant 0 : index
    %94 = vector.load %arg7[%c0_39, %c0_40, %c0_41] : memref<1x1x32xf32, #tpu.memory_space<vmem>>, vector<1x1x32xf32>
    %95 = vector.shape_cast %94 : vector<1x1x32xf32> to vector<1x32xf32>
    %c0_42 = arith.constant 0 : index
    %c0_43 = arith.constant 0 : index
    %c0_44 = arith.constant 0 : index
    %96 = vector.load %arg8[%c0_42, %c0_43, %c0_44] : memref<1x1x32xf32, #tpu.memory_space<vmem>>, vector<1x1x32xf32>
    %97 = vector.shape_cast %96 : vector<1x1x32xf32> to vector<1x32xf32>
    %cst_45 = arith.constant dense<0.000000e+00> : vector<8xf32>
    %98 = vector.multi_reduction <add>, %93, %cst_45 [1] : vector<8x32xf32> to vector<8xf32>
    %99 = vector.shape_cast %98 : vector<8xf32> to vector<8x1xf32>
    %cst_46 = arith.constant 3.200000e+01 : f32
    %100 = vector.broadcast %cst_46 : f32 to vector<8x1xf32>
    %101 = arith.divf %99, %100 : vector<8x1xf32>
    %102 = vector.broadcast %101 : vector<8x1xf32> to vector<8x32xf32>
    %103 = arith.subf %93, %102 : vector<8x32xf32>
    %104 = arith.mulf %103, %103 : vector<8x32xf32>
    %cst_47 = arith.constant dense<0.000000e+00> : vector<8xf32>
    %105 = vector.multi_reduction <add>, %104, %cst_47 [1] : vector<8x32xf32> to vector<8xf32>
    %106 = vector.shape_cast %105 : vector<8xf32> to vector<8x1xf32>
    %cst_48 = arith.constant 3.200000e+01 : f32
    %107 = vector.broadcast %cst_48 : f32 to vector<8x1xf32>
    %108 = arith.divf %106, %107 : vector<8x1xf32>
    %109 = vector.broadcast %101 : vector<8x1xf32> to vector<8x32xf32>
    %110 = arith.subf %93, %109 : vector<8x32xf32>
    %cst_49 = arith.constant 9.99999974E-6 : f32
    %111 = vector.broadcast %cst_49 : f32 to vector<8x1xf32>
    %112 = arith.addf %108, %111 : vector<8x1xf32>
    %113 = math.rsqrt %112 : vector<8x1xf32>
    %114 = vector.broadcast %113 : vector<8x1xf32> to vector<8x32xf32>
    %115 = arith.mulf %110, %114 : vector<8x32xf32>
    %116 = vector.broadcast %95 : vector<1x32xf32> to vector<8x32xf32>
    %117 = arith.mulf %115, %116 : vector<8x32xf32>
    %118 = vector.broadcast %97 : vector<1x32xf32> to vector<8x32xf32>
    %119 = arith.addf %117, %118 : vector<8x32xf32>
    %c0_50 = arith.constant 0 : index
    %c0_51 = arith.constant 0 : index
    %c0_52 = arith.constant 0 : index
    %120 = vector.load %arg9[%c0_50, %c0_51, %c0_52] : memref<1x1x32xf32, #tpu.memory_space<vmem>>, vector<1x1x32xf32>
    %121 = vector.shape_cast %120 : vector<1x1x32xf32> to vector<1x32xf32>
    %122 = vector.broadcast %121 : vector<1x32xf32> to vector<8x32xf32>
    %123 = arith.addf %119, %122 : vector<8x32xf32>
    %c0_53 = arith.constant 0 : index
    %c0_54 = arith.constant 0 : index
    %c0_55 = arith.constant 0 : index
    %124 = vector.load %arg10[%c0_53, %c0_54, %c0_55] : memref<1x1x32xf32, #tpu.memory_space<vmem>>, vector<1x1x32xf32>
    %125 = vector.shape_cast %124 : vector<1x1x32xf32> to vector<1x32xf32>
    %c0_56 = arith.constant 0 : index
    %c0_57 = arith.constant 0 : index
    %c0_58 = arith.constant 0 : index
    %126 = vector.load %arg11[%c0_56, %c0_57, %c0_58] : memref<1x1x32xf32, #tpu.memory_space<vmem>>, vector<1x1x32xf32>
    %127 = vector.shape_cast %126 : vector<1x1x32xf32> to vector<1x32xf32>
    %cst_59 = arith.constant dense<0.000000e+00> : vector<8xf32>
    %128 = vector.multi_reduction <add>, %123, %cst_59 [1] : vector<8x32xf32> to vector<8xf32>
    %129 = vector.shape_cast %128 : vector<8xf32> to vector<8x1xf32>
    %cst_60 = arith.constant 3.200000e+01 : f32
    %130 = vector.broadcast %cst_60 : f32 to vector<8x1xf32>
    %131 = arith.divf %129, %130 : vector<8x1xf32>
    %132 = vector.broadcast %131 : vector<8x1xf32> to vector<8x32xf32>
    %133 = arith.subf %123, %132 : vector<8x32xf32>
    %134 = arith.mulf %133, %133 : vector<8x32xf32>
    %cst_61 = arith.constant dense<0.000000e+00> : vector<8xf32>
    %135 = vector.multi_reduction <add>, %134, %cst_61 [1] : vector<8x32xf32> to vector<8xf32>
    %136 = vector.shape_cast %135 : vector<8xf32> to vector<8x1xf32>
    %cst_62 = arith.constant 3.200000e+01 : f32
    %137 = vector.broadcast %cst_62 : f32 to vector<8x1xf32>
    %138 = arith.divf %136, %137 : vector<8x1xf32>
    %139 = vector.broadcast %131 : vector<8x1xf32> to vector<8x32xf32>
    %140 = arith.subf %123, %139 : vector<8x32xf32>
    %cst_63 = arith.constant 9.99999974E-6 : f32
    %141 = vector.broadcast %cst_63 : f32 to vector<8x1xf32>
    %142 = arith.addf %138, %141 : vector<8x1xf32>
    %143 = math.rsqrt %142 : vector<8x1xf32>
    %144 = vector.broadcast %143 : vector<8x1xf32> to vector<8x32xf32>
    %145 = arith.mulf %140, %144 : vector<8x32xf32>
    %146 = vector.broadcast %125 : vector<1x32xf32> to vector<8x32xf32>
    %147 = arith.mulf %145, %146 : vector<8x32xf32>
    %148 = vector.broadcast %127 : vector<1x32xf32> to vector<8x32xf32>
    %149 = arith.addf %147, %148 : vector<8x32xf32>
    %c0_64 = arith.constant 0 : index
    %c0_65 = arith.constant 0 : index
    %c0_66 = arith.constant 0 : index
    %150 = vector.load %arg12[%c0_64, %c0_65, %c0_66] : memref<1x32x2048xbf16, #tpu.memory_space<vmem>>, vector<1x32x2048xbf16>
    %151 = vector.shape_cast %150 : vector<1x32x2048xbf16> to vector<32x2048xbf16>
    %152 = arith.truncf %149 : vector<8x32xf32> to vector<8x32xbf16>
    %cst_67 = arith.constant dense<0.000000e+00> : vector<8x2048xf32>
    %153 = tpu.matmul %152, %151, %cst_67 {dimension_numbers = #tpu.dot_dimension_numbers<[1], [0], [0], [1], [0, 0, 1, 1], [], []>} : vector<8x32xbf16>, vector<32x2048xbf16>, vector<8x2048xf32> -> vector<8x2048xf32>
    %c0_68 = arith.constant 0 : index
    %c0_69 = arith.constant 0 : index
    %c0_70 = arith.constant 0 : index
    %154 = vector.load %arg13[%c0_68, %c0_69, %c0_70] : memref<1x1x2048xf32, #tpu.memory_space<vmem>>, vector<1x1x2048xf32>
    %155 = vector.shape_cast %154 : vector<1x1x2048xf32> to vector<1x2048xf32>
    %156 = vector.broadcast %155 : vector<1x2048xf32> to vector<8x2048xf32>
    %157 = arith.addf %153, %156 : vector<8x2048xf32>
    %cst_71 = arith.constant 0.000000e+00 : f32
    %158 = vector.broadcast %cst_71 : f32 to vector<8x2048xf32>
    %159 = arith.maximumf %157, %158 : vector<8x2048xf32>
    %c0_72 = arith.constant 0 : index
    %c0_73 = arith.constant 0 : index
    %c0_74 = arith.constant 0 : index
    %160 = vector.load %arg14[%c0_72, %c0_73, %c0_74] : memref<1x2048x32xbf16, #tpu.memory_space<vmem>>, vector<1x2048x32xbf16>
    %161 = vector.shape_cast %160 : vector<1x2048x32xbf16> to vector<2048x32xbf16>
    %162 = arith.truncf %159 : vector<8x2048xf32> to vector<8x2048xbf16>
    %cst_75 = arith.constant dense<0.000000e+00> : vector<8x32xf32>
    %163 = tpu.matmul %162, %161, %cst_75 {dimension_numbers = #tpu.dot_dimension_numbers<[1], [0], [0], [1], [0, 0, 1, 1], [], []>} : vector<8x2048xbf16>, vector<2048x32xbf16>, vector<8x32xf32> -> vector<8x32xf32>
    %c0_76 = arith.constant 0 : index
    %c0_77 = arith.constant 0 : index
    %c0_78 = arith.constant 0 : index
    %164 = vector.load %arg15[%c0_76, %c0_77, %c0_78] : memref<1x1x32xf32, #tpu.memory_space<vmem>>, vector<1x1x32xf32>
    %165 = vector.shape_cast %164 : vector<1x1x32xf32> to vector<1x32xf32>
    %166 = vector.broadcast %165 : vector<1x32xf32> to vector<8x32xf32>
    %167 = arith.addf %163, %166 : vector<8x32xf32>
    %168 = arith.addf %149, %167 : vector<8x32xf32>
    %c0_79 = arith.constant 0 : index
    %c0_80 = arith.constant 0 : index
    %c0_81 = arith.constant 0 : index
    %169 = vector.load %arg16[%c0_79, %c0_80, %c0_81] : memref<1x1x32xf32, #tpu.memory_space<vmem>>, vector<1x1x32xf32>
    %170 = vector.shape_cast %169 : vector<1x1x32xf32> to vector<1x32xf32>
    %c0_82 = arith.constant 0 : index
    %c0_83 = arith.constant 0 : index
    %c0_84 = arith.constant 0 : index
    %171 = vector.load %arg17[%c0_82, %c0_83, %c0_84] : memref<1x1x32xf32, #tpu.memory_space<vmem>>, vector<1x1x32xf32>
    %172 = vector.shape_cast %171 : vector<1x1x32xf32> to vector<1x32xf32>
    %cst_85 = arith.constant dense<0.000000e+00> : vector<8xf32>
    %173 = vector.multi_reduction <add>, %168, %cst_85 [1] : vector<8x32xf32> to vector<8xf32>
    %174 = vector.shape_cast %173 : vector<8xf32> to vector<8x1xf32>
    %cst_86 = arith.constant 3.200000e+01 : f32
    %175 = vector.broadcast %cst_86 : f32 to vector<8x1xf32>
    %176 = arith.divf %174, %175 : vector<8x1xf32>
    %177 = vector.broadcast %176 : vector<8x1xf32> to vector<8x32xf32>
    %178 = arith.subf %168, %177 : vector<8x32xf32>
    %179 = arith.mulf %178, %178 : vector<8x32xf32>
    %cst_87 = arith.constant dense<0.000000e+00> : vector<8xf32>
    %180 = vector.multi_reduction <add>, %179, %cst_87 [1] : vector<8x32xf32> to vector<8xf32>
    %181 = vector.shape_cast %180 : vector<8xf32> to vector<8x1xf32>
    %cst_88 = arith.constant 3.200000e+01 : f32
    %182 = vector.broadcast %cst_88 : f32 to vector<8x1xf32>
    %183 = arith.divf %181, %182 : vector<8x1xf32>
    %184 = vector.broadcast %176 : vector<8x1xf32> to vector<8x32xf32>
    %185 = arith.subf %168, %184 : vector<8x32xf32>
    %cst_89 = arith.constant 9.99999974E-6 : f32
    %186 = vector.broadcast %cst_89 : f32 to vector<8x1xf32>
    %187 = arith.addf %183, %186 : vector<8x1xf32>
    %188 = math.rsqrt %187 : vector<8x1xf32>
    %189 = vector.broadcast %188 : vector<8x1xf32> to vector<8x32xf32>
    %190 = arith.mulf %185, %189 : vector<8x32xf32>
    %191 = vector.broadcast %170 : vector<1x32xf32> to vector<8x32xf32>
    %192 = arith.mulf %190, %191 : vector<8x32xf32>
    %193 = vector.broadcast %172 : vector<1x32xf32> to vector<8x32xf32>
    %194 = arith.addf %192, %193 : vector<8x32xf32>
    %c0_90 = arith.constant 0 : index
    %c0_91 = arith.constant 0 : index
    %195 = vector.load %arg23[%c0_90, %c0_91] : memref<8x32xf32, #tpu.memory_space<vmem>>, vector<8x32xf32>
    tpu.vector_store %arg23[%c0_90, %c0_91], %194 {strides = array<i32>} : memref<8x32xf32, #tpu.memory_space<vmem>>, vector<8x32xf32>,
    %c1_i32 = arith.constant 1 : i32
    %196 = arith.cmpi eq, %arg1, %c1_i32 : i32
    %197 = arith.extui %196 : i1 to i32
    %c0_i32_92 = arith.constant 0 : i32
    %198 = arith.cmpi ne, %197, %c0_i32_92 : i32
    scf.if %198 {
      %c0_93 = arith.constant 0 : index
      %c0_94 = arith.constant 0 : index
      %199 = vector.load %arg18[%c0_93, %c0_94] : memref<1x32xf32, #tpu.memory_space<vmem>>, vector<1x32xf32>
      %c0_95 = arith.constant 0 : index
      %c0_96 = arith.constant 0 : index
      %200 = vector.load %arg19[%c0_95, %c0_96] : memref<1x32xf32, #tpu.memory_space<vmem>>, vector<1x32xf32>
      %cst_97 = arith.constant dense<0.000000e+00> : vector<8xf32>
      %201 = vector.multi_reduction <add>, %194, %cst_97 [1] : vector<8x32xf32> to vector<8xf32>
      %202 = vector.shape_cast %201 : vector<8xf32> to vector<8x1xf32>
      %cst_98 = arith.constant 3.200000e+01 : f32
      %203 = vector.broadcast %cst_98 : f32 to vector<8x1xf32>
      %204 = arith.divf %202, %203 : vector<8x1xf32>
      %205 = vector.broadcast %204 : vector<8x1xf32> to vector<8x32xf32>
      %206 = arith.subf %194, %205 : vector<8x32xf32>
      %207 = arith.mulf %206, %206 : vector<8x32xf32>
      %cst_99 = arith.constant dense<0.000000e+00> : vector<8xf32>
      %208 = vector.multi_reduction <add>, %207, %cst_99 [1] : vector<8x32xf32> to vector<8xf32>
      %209 = vector.shape_cast %208 : vector<8xf32> to vector<8x1xf32>
      %cst_100 = arith.constant 3.200000e+01 : f32
      %210 = vector.broadcast %cst_100 : f32 to vector<8x1xf32>
      %211 = arith.divf %209, %210 : vector<8x1xf32>
      %212 = vector.broadcast %204 : vector<8x1xf32> to vector<8x32xf32>
      %213 = arith.subf %194, %212 : vector<8x32xf32>
      %cst_101 = arith.constant 9.99999974E-6 : f32
      %214 = vector.broadcast %cst_101 : f32 to vector<8x1xf32>
      %215 = arith.addf %211, %214 : vector<8x1xf32>
      %216 = math.rsqrt %215 : vector<8x1xf32>
      %217 = vector.broadcast %216 : vector<8x1xf32> to vector<8x32xf32>
      %218 = arith.mulf %213, %217 : vector<8x32xf32>
      %219 = vector.broadcast %199 : vector<1x32xf32> to vector<8x32xf32>
      %220 = arith.mulf %218, %219 : vector<8x32xf32>
      %221 = vector.broadcast %200 : vector<1x32xf32> to vector<8x32xf32>
      %222 = arith.addf %220, %221 : vector<8x32xf32>
      %c0_102 = arith.constant 0 : index
      %c0_103 = arith.constant 0 : index
      %223 = vector.load %arg20[%c0_102, %c0_103] : memref<32x128xbf16, #tpu.memory_space<vmem>>, vector<32x128xbf16>
      %224 = arith.truncf %222 : vector<8x32xf32> to vector<8x32xbf16>
      %cst_104 = arith.constant dense<0.000000e+00> : vector<8x128xf32>
      %225 = tpu.matmul %224, %223, %cst_104 {dimension_numbers = #tpu.dot_dimension_numbers<[1], [0], [0], [1], [0, 0, 1, 1], [], []>} : vector<8x32xbf16>, vector<32x128xbf16>, vector<8x128xf32> -> vector<8x128xf32>
      %c0_105 = arith.constant 0 : index
      %c0_106 = arith.constant 0 : index
      %226 = vector.load %arg21[%c0_105, %c0_106] : memref<1x128xf32, #tpu.memory_space<vmem>>, vector<1x128xf32>
      %227 = vector.broadcast %226 : vector<1x128xf32> to vector<8x128xf32>
      %228 = arith.addf %225, %227 : vector<8x128xf32>
      %c0_107 = arith.constant 0 : index
      %c0_108 = arith.constant 0 : index
      %c0_109 = arith.constant 0 : index
      %229 = vector.load %arg22[%c0_107, %c0_108, %c0_109] : memref<1x8x128xf32, #tpu.memory_space<vmem>>, vector<1x8x128xf32>
      %230 = vector.shape_cast %229 : vector<1x8x128xf32> to vector<8x128xf32>
      %231 = vector.shape_cast %228 : vector<8x128xf32> to vector<1x8x128xf32>
      tpu.vector_store %arg22[%c0_107, %c0_108, %c0_109], %231 {strides = array<i32>} : memref<1x8x128xf32, #tpu.memory_space<vmem>>, vector<1x8x128xf32>,
    } else {
    }
    return
  }
  func.func @transform_0(%arg0: i32, %arg1: i32) -> (i32, i32, i32) {
    %c0_i32 = arith.constant 0 : i32
    %c0_i32_0 = arith.constant 0 : i32
    %c0_i32_1 = arith.constant 0 : i32
    return %arg0, %c0_i32, %c0_i32_0 : i32, i32, i32
  }
  func.func @transform_1(%arg0: i32, %arg1: i32) -> (i32, i32, i32) {
    %c0_i32 = arith.constant 0 : i32
    %c0_i32_0 = arith.constant 0 : i32
    %c0_i32_1 = arith.constant 0 : i32
    return %arg1, %c0_i32, %c0_i32_0 : i32, i32, i32
  }
  func.func @transform_2(%arg0: i32, %arg1: i32) -> (i32, i32, i32) {
    %c0_i32 = arith.constant 0 : i32
    %c0_i32_0 = arith.constant 0 : i32
    %c0_i32_1 = arith.constant 0 : i32
    return %arg1, %c0_i32, %c0_i32_0 : i32, i32, i32
  }
  func.func @transform_3(%arg0: i32, %arg1: i32) -> (i32, i32, i32) {
    %c0_i32 = arith.constant 0 : i32
    %c0_i32_0 = arith.constant 0 : i32
    %c0_i32_1 = arith.constant 0 : i32
    return %arg1, %c0_i32, %c0_i32_0 : i32, i32, i32
  }
  func.func @transform_4(%arg0: i32, %arg1: i32) -> (i32, i32, i32) {
    %c0_i32 = arith.constant 0 : i32
    %c0_i32_0 = arith.constant 0 : i32
    %c0_i32_1 = arith.constant 0 : i32
    return %arg1, %c0_i32, %c0_i32_0 : i32, i32, i32
  }
  func.func @transform_5(%arg0: i32, %arg1: i32) -> (i32, i32, i32) {
    %c0_i32 = arith.constant 0 : i32
    %c0_i32_0 = arith.constant 0 : i32
    %c0_i32_1 = arith.constant 0 : i32
    return %arg1, %c0_i32, %c0_i32_0 : i32, i32, i32
  }
  func.func @transform_6(%arg0: i32, %arg1: i32) -> (i32, i32, i32) {
    %c0_i32 = arith.constant 0 : i32
    %c0_i32_0 = arith.constant 0 : i32
    %c0_i32_1 = arith.constant 0 : i32
    return %arg1, %c0_i32, %c0_i32_0 : i32, i32, i32
  }
  func.func @transform_7(%arg0: i32, %arg1: i32) -> (i32, i32, i32) {
    %c0_i32 = arith.constant 0 : i32
    %c0_i32_0 = arith.constant 0 : i32
    %c0_i32_1 = arith.constant 0 : i32
    return %arg1, %c0_i32, %c0_i32_0 : i32, i32, i32
  }
  func.func @transform_8(%arg0: i32, %arg1: i32) -> (i32, i32, i32) {
    %c0_i32 = arith.constant 0 : i32
    %c0_i32_0 = arith.constant 0 : i32
    %c0_i32_1 = arith.constant 0 : i32
    return %arg1, %c0_i32, %c0_i32_0 : i32, i32, i32
  }
  func.func @transform_9(%arg0: i32, %arg1: i32) -> (i32, i32, i32) {
    %c0_i32 = arith.constant 0 : i32
    %c0_i32_0 = arith.constant 0 : i32
    %c0_i32_1 = arith.constant 0 : i32
    return %arg1, %c0_i32, %c0_i32_0 : i32, i32, i32
  }
  func.func @transform_10(%arg0: i32, %arg1: i32) -> (i32, i32, i32) {
    %c0_i32 = arith.constant 0 : i32
    %c0_i32_0 = arith.constant 0 : i32
    %c0_i32_1 = arith.constant 0 : i32
    return %arg1, %c0_i32, %c0_i32_0 : i32, i32, i32
  }
  func.func @transform_11(%arg0: i32, %arg1: i32) -> (i32, i32, i32) {
    %c0_i32 = arith.constant 0 : i32
    %c0_i32_0 = arith.constant 0 : i32
    %c0_i32_1 = arith.constant 0 : i32
    return %arg1, %c0_i32, %c0_i32_0 : i32, i32, i32
  }
  func.func @transform_12(%arg0: i32, %arg1: i32) -> (i32, i32, i32) {
    %c0_i32 = arith.constant 0 : i32
    %c0_i32_0 = arith.constant 0 : i32
    %c0_i32_1 = arith.constant 0 : i32
    return %arg1, %c0_i32, %c0_i32_0 : i32, i32, i32
  }
  func.func @transform_13(%arg0: i32, %arg1: i32) -> (i32, i32, i32) {
    %c0_i32 = arith.constant 0 : i32
    %c0_i32_0 = arith.constant 0 : i32
    %c0_i32_1 = arith.constant 0 : i32
    return %arg1, %c0_i32, %c0_i32_0 : i32, i32, i32
  }
  func.func @transform_14(%arg0: i32, %arg1: i32) -> (i32, i32, i32) {
    %c0_i32 = arith.constant 0 : i32
    %c0_i32_0 = arith.constant 0 : i32
    %c0_i32_1 = arith.constant 0 : i32
    return %arg1, %c0_i32, %c0_i32_0 : i32, i32, i32
  }
  func.func @transform_15(%arg0: i32, %arg1: i32) -> (i32, i32, i32) {
    %c0_i32 = arith.constant 0 : i32
    %c0_i32_0 = arith.constant 0 : i32
    %c0_i32_1 = arith.constant 0 : i32
    return %arg1, %c0_i32, %c0_i32_0 : i32, i32, i32
  }
  func.func @transform_16(%arg0: i32, %arg1: i32) -> (i32, i32) {
    %c0_i32 = arith.constant 0 : i32
    %c0_i32_0 = arith.constant 0 : i32
    %c0_i32_1 = arith.constant 0 : i32
    return %c0_i32, %c0_i32_0 : i32, i32
  }
  func.func @transform_17(%arg0: i32, %arg1: i32) -> (i32, i32) {
    %c0_i32 = arith.constant 0 : i32
    %c0_i32_0 = arith.constant 0 : i32
    %c0_i32_1 = arith.constant 0 : i32
    return %c0_i32, %c0_i32_0 : i32, i32
  }
  func.func @transform_18(%arg0: i32, %arg1: i32) -> (i32, i32) {
    %c0_i32 = arith.constant 0 : i32
    %c0_i32_0 = arith.constant 0 : i32
    %c0_i32_1 = arith.constant 0 : i32
    return %c0_i32, %c0_i32_0 : i32, i32
  }
  func.func @transform_19(%arg0: i32, %arg1: i32) -> (i32, i32) {
    %c0_i32 = arith.constant 0 : i32
    %c0_i32_0 = arith.constant 0 : i32
    %c0_i32_1 = arith.constant 0 : i32
    return %c0_i32, %c0_i32_0 : i32, i32
  }
  func.func @transform_20(%arg0: i32, %arg1: i32) -> (i32, i32, i32) {
    %c0_i32 = arith.constant 0 : i32
    %c0_i32_0 = arith.constant 0 : i32
    %c0_i32_1 = arith.constant 0 : i32
    return %arg0, %c0_i32, %c0_i32_0 : i32, i32, i32
  }
}

</mosaic_0001>

<bundles_post_ra>
// kernel: tpu_custom_call.1
= control target key start
LH: loop header
LB: loop body
LE: loop exit
PB: predicated region body
PF: predicated region fallthrough
CT: control target
= control target key end

     0   :  { %s5238_s0 = inlined_call_operand.vmem [shape: f32[2,8,32], index: 0, kind: input, shape index: {}]   ;;  %s5239_s1 = inlined_call_operand.vmem [shape: bf16[2,32,96], index: 1, kind: input, shape index: {}]   ;;  %s5240_s2 = inlined_call_operand.vmem [shape: f32[2,1,96], index: 2, kind: input, shape index: {}]   ;;  %s5241_s3 = inlined_call_operand.vmem [shape: bf16[2,32,32], index: 3, kind: input, shape index: {}]   ;;  %s5242_s4 = inlined_call_operand.vmem [shape: f32[2,1,32], index: 4, kind: input, shape index: {}]   ;;  %s5243_s5 = inlined_call_operand.vmem [shape: f32[2,1,32], index: 5, kind: input, shape index: {}]   ;;  %s5244_s6 = inlined_call_operand.vmem [shape: f32[2,1,32], index: 6, kind: input, shape index: {}]   ;;  %s5245_s7 = inlined_call_operand.vmem [shape: f32[2,1,32], index: 7, kind: input, shape index: {}]   ;;  %s5246_s8 = inlined_call_operand.vmem [shape: f32[2,1,32], index: 8, kind: input, shape index: {}]   ;;  %s5247_s9 = inlined_call_operand.vmem [shape: f32[2,1,32], index: 9, kind: input, shape index: {}]   ;;  %s5248_s10 = inlined_call_operand.vmem [shape: bf16[2,32,2048], index: 10, kind: input, shape index: {}]   ;;  %s5249_s11 = inlined_call_operand.vmem [shape: f32[2,1,2048], index: 11, kind: input, shape index: {}]   ;;  %s5250_s12 = inlined_call_operand.vmem [shape: bf16[2,2048,32], index: 12, kind: input, shape index: {}]   ;;  %s5251_s13 = inlined_call_operand.vmem [shape: f32[2,1,32], index: 13, kind: input, shape index: {}]   ;;  %s5252_s14 = inlined_call_operand.vmem [shape: f32[2,1,32], index: 14, kind: input, shape index: {}]   ;;  %s5253_s15 = inlined_call_operand.vmem [shape: f32[2,1,32], index: 15, kind: input, shape index: {}]   ;;  %s5254_s16 = inlined_call_operand.vmem [shape: f32[1,32], index: 16, kind: input, shape index: {}]   ;;  %s5255_s17 = inlined_call_operand.vmem [shape: f32[1,32], index: 17, kind: input, shape index: {}]   ;;  %s5256_s18 = inlined_call_operand.vmem [shape: bf16[32,128], index: 18, kind: input, shape index: {}]   ;;  %s5257_s19 = inlined_call_operand.vmem [shape: f32[1,128], index: 19, kind: input, shape index: {}]   ;;  %s5258_s20 = inlined_call_operand.hbm [shape: f32[2,8,128], index: 20, kind: output, shape index: {}]  }
   0x1   :  { %5276 = sst [smem:[#allocation20_spill]] %s5238_s0 }
   0x2   :  { %5277 = sst [smem:[#allocation21_spill]] %s5239_s1 }
   0x3   :  { %5278 = sst [smem:[#allocation22_spill]] %s5240_s2 }
   0x4   :  { %5279 = sst [smem:[#allocation23_spill]] %s5241_s3 }
   0x5   :  { %5280 = sst [smem:[#allocation24_spill]] %s5242_s4 }
   0x6   :  { %5281 = sst [smem:[#allocation25_spill]] %s5248_s10 }
   0x7   :  { %5282 = sst [smem:[#allocation26_spill]] %s5250_s12 }
   0x8   :  { %5283 = sst [smem:[#allocation27_spill]] %s5252_s14 }
   0x9   :  { %5284 = sst [smem:[#allocation28_spill]] %s5253_s15 }
   0xa   :  { %5285 = sst [smem:[#allocation29_spill]] %s5254_s16 }
   0xb   :  { %5286 = sst [smem:[#allocation30_spill]] %s5255_s17 }
   0xc   :  { %5287 = sst [smem:[#allocation31_spill]] %s5256_s18 }
   0xd   :  { %5288 = sst [smem:[#allocation32_spill]] %s5257_s19 }
   0xe   :  { %5289 = sst [smem:[#allocation33_spill]] %s5258_s20 }
   0xf   :  { %25 = vsyncpa [#allocation4], 0 }
  0x10   :  { %27 = vsyncpa [#allocation4 + $0x1], 0  ;;  %s4648_s1 = smov 0   ;;  %s4650_s22 = smov 0  }
  0x11   :  { %s4652_s23 = smov 0   ;;  %s4654_s24 = smov 0  }
  0x12   :  { %s4656_s2 = smov 0   ;;  %s4658_s25 = smov 0  }
  0x13   :  { %s4660_s3 = smov 0   ;;  %s4662_s26 = smov 0  }
  0x14 LB: > { %5290 = sst [smem:[#allocation6_spill]] %s4498_s1  ;;  %s3420_s27 = sadd.s32 4294967295, %s4526_s26   ;;  %s4526_s26 = sphi %s4662_s26, %s33_s26   ;;  %s4522_s3 = sphi %s4660_s3, %s5347_s3   ;;  %s4518_s25 = sphi %s4658_s25, %s5346_s25   ;;  %s4514_s2 = sphi %s4656_s2, %s5345_s2   ;;  %s4510_s24 = sphi %s4654_s24, %s5344_s24   ;;  %s4506_s23 = sphi %s4652_s23, %s5343_s23   ;;  %s4502_s22 = sphi %s4650_s22, %s5342_s22   ;;  %s4498_s1 = sphi %s4648_s1, %s5341_s1  }
  0x15   : > { %5291 = sst [smem:[#allocation7_spill]] %s4502_s22  ;;  %s3421_s28 = sadd.s32 4294967294, %s4526_s26  }
  0x16   : > { %5292 = sst [smem:[#allocation8_spill]] %s4506_s23  ;;  %s42_s4 = sadd.s32 1, %s4518_s25 }
  0x17   : > { %5293 = sst [smem:[#allocation9_spill]] %s4510_s24  ;;  %p43_p0 = scmp.ge.s32.totalorder %s42_s4, 2 }
  0x18   : > { %5294 = sst [smem:[#allocation10_spill]] %s4514_s2  ;;  %s45_s29 = sadd.s32 1, %s4522_s3 }
  0x19   : > { %5295 = sst [smem:[#allocation11_spill]] %s4518_s25  ;;  %p562_p1 = scmp.ne.s32.totalorder %s4506_s23, %s4502_s22 }
  0x1a   : > { %5296 = sst [smem:[#allocation12_spill]] %s4522_s3  ;;  %p563_p2 = scmp.eq.s32.totalorder %s3420_s27, 3 }
  0x1b   : > { %5297 = sst [smem:[#allocation13_spill]] %s4526_s26  ;;  %s5349_s4 = smov (%p43_p0, %s42_s4), 0 }
  0x1c   : > { %5298 = sst [smem:[#allocation14_spill]] %s5349_s4  ;;  %s5351_s29 = smov (!%p43_p0, %s45_s29), %s4522_s3 }
  0x1d   : > { %p4697_p3 = por %p563_p2, %p562_p1  ;;  %p568_p4 = scmp.ne.s32.totalorder %s4502_s22, %s4498_s1 }
  0x1e   : > { %p47_p5 = scmp.ge.s32.totalorder %s5351_s29, 2  ;;  %p569_p6 = scmp.eq.s32.totalorder %s3421_s28, 3 }
  0x1f   : > { %s5299_s30 = scalar_select %p4697_p3, 1, 0 }
  0x20   : > { %p3424_p7 = scmp.ge.s32.totalorder %s4526_s26, 1  ;;  %p705_p8 = scmp.lt.s32.totalorder %s4526_s26, 5 }
  0x21   : > { %5300 = sst [smem:[#allocation15_spill]] %s5299_s30  ;;  %s5353_s29 = smov (%p47_p5, %s5351_s29), 0 }
  0x22   : > { %5301 = sst [smem:[#allocation16_spill]] %s5353_s29  ;;  %p4707_p9 = por %p569_p6, %p568_p4 }
  0x23   : > { %p706_p10 = pnand %p3424_p7, %p705_p8  ;;  %s549_s21 = ssub.s32 %s4522_s3, %s5353_s29 }
  0x24   : > { %s5302_s0 = scalar_select %p4707_p9, 1, 0 }
  0x25   : > { %s552_s27 = sadd.s32 1, %s4506_s23  ;;  %p550_p11 = scmp.eq.s32.totalorder %s549_s21, 0 }
  0x26   : > { %5303 = sst [smem:[#allocation17_spill]] %s5302_s0  ;;  %709 = sbr.rel (%p706_p10) target bundleno = 3088 (0xc10), region = 100 }
  0x27   : > { %s4715_s4 = scalar_select %p550_p11, %s4506_s23, %s552_s27  }
  0x29   : > { %5304 = sst [smem:[#allocation18_spill]] %s4715_s4 }
  0x2b   : > { %s5264_s28 = sand.u32 1, %s4502_s22   ;;  %p816_p12 = scmp.lt.s32.totalorder %s4514_s2, 1 }
  0x2c   : > { %s4721_s25 = sshll.u32 %s5264_s28, 3  ;;  %p820_p13 = scmp.lt.s32.totalorder %s4510_s24, 1 }
  0x2d   : > { %s817_s0 = scalar_select %p816_p12, %s4514_s2, 1 }
  0x2e   : > { %s4726_s1 = scalar_select %p820_p13, %s4510_s24, 1 }
  0x2f   : > { %s3426_s21 = sshll.u32 %s817_s0, 3  ;;  %s5305_s3 = sld [smem:[#allocation20_spill]] }
  0x30   : > { %s4137_s4 = sshll.u32 %s4726_s1, 4  ;;  %s5306_s20 = sld [smem:[#allocation21_spill]] }
  0x31   : > { %s5308_s24 = sld [smem:[#allocation23_spill]]  ;;  %s4139_s27 = sshll.u32 %s4726_s1, 8 }
  0x32   : > { %s5311_s10 = sld [smem:[#allocation25_spill]]  ;;  %s4777_s22 = scalar_lea.vmem %s5249_s11, %s4137_s4 }
  0x33   : > { %s4140_s2 = sshll.u32 %s4726_s1, 10  ;;  %s867_s16 = scalar_lea.vmem %s5251_s13, %s4726_s1 }
  0x34   : > { %s5312_s12 = sld [smem:[#allocation26_spill]] }
  0x35   : > { %s819_s28 = scalar_lea.vmem %s5305_s3, %s3426_s21  ;;  %s5313_s3 = sld [smem:[#allocation27_spill]] }
  0x36   : > { %s824_s30 = scalar_lea.vmem %s5306_s20, %s4137_s4  ;;  %s5315_s26 = sld [smem:[#allocation9_spill]] }
  0x37   : > { %s4742_s0 = scalar_lea.vmem %s5308_s24, %s4137_s4  ;;  %s815_s4 = scalar_lea.vmem [#allocation3], %s4721_s25 }
  0x38   : > { %5309 = sst [smem:[#allocation19_spill]] %s4742_s0  ;;  %s4772_s15 = scalar_lea.vmem %s5311_s10, %s4139_s27 }
  0x39   : > { %s5314_s10 = sld [smem:[#allocation28_spill]] }
  0x3a   : > { %s4787_s0 = scalar_lea.vmem %s5312_s12, %s4140_s2 }
  0x3b   : > { %s870_s27 = scalar_lea.vmem %s5313_s3, %s4726_s1 }
  0x3c   : > { %p3436_p0 = scmp.ne.s32.totalorder %s5315_s26, 0 }
  0x3e   : > { %878 = sbr.rel (%p3436_p0) target bundleno = 69 (0x45), region = 104 }
  0x3f   : > { %s873_s20 = scalar_lea.vmem %s5314_s10, %s4726_s1 }
  0x43   : > { %v879_v0 = vld [vmem:[%s819_s28] sm:$0xff]  ;;  %vm880_vm0 = vcmask 261120  }
  0x44   : > { %881 = vst.msk [vmem:[#allocation2] sm:$0xff] %vm880_vm0, %v879_v0 }
  0x45 PF: > { %v4142_v1 = vld [vmem:[%s824_s30 + $0x8] sm:$0xff]  ;;  %v4141_v2 = vld [vmem:[%s824_s30] sm:$0xff]  ;;  %vm904_vm1 = vcmask 261120   ;;  %s5316_s21 = sld [smem:[#allocation22_spill]]  ;;  %s4528_s23 = smov 64   ;;  %vm924_vm2 = vcmask 64512  }
  0x46   : > { %914 = vmatpush.bf16.msra.mxu0 %v4142_v1  ;;  %s4529_s30 = smov 120   ;;  %s4530_s24 = smov 96  }
  0x47   : > { %s4531_s29 = smov 56   ;;  %s4532_s2 = smov 88  }
  0x48   : > { %s4533_s19 = smov 72   ;;  %s4534_s18 = smov 80  }
  0x49   : > { %s4535_s12 = smov 112   ;;  %s4536_s3 = smov 104  }
  0x4a   : > { %915 = vmatpush.bf16.msra.mxu0 %v4141_v2  ;;  %s4537_s14 = smov 40   ;;  %s4538_s26 = smov 8  }
  0x4b   : > { %v4799_v3 = vld [vmem:[#allocation2] sm:$0xff]  ;;  %s5317_s28 = scalar_lea.vmem %s5316_s21, %s4726_s1  ;;  %s4539_s10 = smov 48  }
  0x4c   : > { %v887_v4 = vpack.c.bf16 %v4799_v3, %v4799_v3  ;;  %v4393_v5 = vld [vmem:[%s5317_s28] ss:$0 sm:$0xff]  ;;  %s5318_s17 = sld [smem:[#allocation19_spill]]  ;;  %s4540_s21 = smov 16  }
  0x4d   : > { %s4541_s28 = smov 24  }
  0x4e   : > { %3445 = vmatmul.msk.bf16.vlgmr.msra.gmra.mxu0 %vm904_vm1, %v887_v4 }
  0xcb   : > { %v917_v6 = vpop.f32.mrf.mxu0 }
  0xcc   : > { %v4809_v7 = vadd.f32 %v4393_v5, %v917_v6 }
  0xce   : > { %974 = vrot.lane.b32.xlu2 %v4809_v7, %s4528_s23  ;;  %1000 = vrot.lane.b32.xlu1 %v4809_v7, %s4529_s30  ;;  %s5324_s23 = scalar_lea.vmem %s5246_s8, %s4726_s1 }
  0xcf   : > { %922 = vrot.lane.b32.xlu0 %v4809_v7, %s4530_s24  ;;  %s5319_s24 = sld [smem:[#allocation24_spill]] }
  0xd3   : > { %v919_v8 = vpop.f32.mrf.mxu0 }
  0xd6   : > { %1053 = vrot.lane.b32.xlu2 %v4809_v7, %s4531_s29  ;;  %s5320_s29 = scalar_lea.vmem %s5319_s24, %s4726_s1 }
  0xd7   : > { %1002 = vrot.lane.b32.xlu0 %v4809_v7, %s4532_s2 }
 0x128   : > { %v975_v9 = vpop.permute.xlu2 %974 }
 0x129   : > { %995 = vmatpush.msra.mxu2 %v975_v9 }
 0x130   : > { %v1054_v10 = vpop.permute.xlu2 %1053 }
 0x131   : > { %1074 = vmatpush.msrb.mxu2 %v1054_v10 }
 0x140   : > { %v1001_v13 = vpop.permute.xlu1 %1000 }
 0x141   : > { %v923_v11 = vpop.permute.xlu0 %922 }
 0x142   : > { %3446 = vmatpush.xpose.msk.msra.mxu1 %vm924_vm2, %v923_v11 }
 0x145   : > { %3447 = vmatmul.msk.f32.vlgmr.msra.gmra.mxu1 %vm924_vm2, %v4809_v7 }
 0x149   : > { %v1003_v12 = vpop.permute.xlu0 %1002 }
 0x14a   : > { %3449 = vmatpush.xpose.msk.msrb.mxu0 %vm924_vm2, %v1003_v12 }
 0x14d   : > { %3450 = vmatmul.msk.f32.vlgmr.msrb.gmra.mxu0 %vm924_vm2, %v1001_v13 }
 0x1c2   : > { %v946_v14 = vpop.f32.mrf.mxu1 }
 0x1c3   : > { %v949_v15 = vmul.f32 0.35355338, %v946_v14 }
 0x1c5   : > { %v950_v16 = vsel %vm924_vm2, %v949_v15, -inf }
 0x1c6   : > { %951 = vmax.xlane.f32.xlu1 %v950_v16 }
 0x1ca   : > { %v1025_v17 = vpop.f32.mrf.mxu0 }
 0x1cb   : > { %v1028_v18 = vmul.f32 0.35355338, %v1025_v17 }
 0x1cd   : > { %v1029_v19 = vsel %vm924_vm2, %v1028_v18, -inf }
 0x1ce   : > { %1030 = vmax.xlane.f32.xlu2 %v1029_v19 }
 0x1df   : > { %1160 = vrot.lane.b32.xlu1 %v4809_v7, %s4533_s19 }
 0x1e6   : > { %1081 = vrot.lane.b32.xlu2 %v4809_v7, %s4534_s18  ;;  %s5321_s18 = scalar_lea.vmem %s5243_s5, %s4726_s1 }
 0x239   : > { %v952_v20 = vpop.xlane.xlu1 %951 }
 0x23a   : > { %v953_v21 = vsub.f32 %v949_v15, %v952_v20 }
 0x23c   : > { %v954_v22 = vmul.f32 1.442695, %v953_v21 }
 0x23e   : > { %4403 = vpow2.f32 %v954_v22 }
 0x241   : > { %v1031_v23 = vpop.xlane.xlu2 %1030 }
 0x242   : > { %v1032_v24 = vsub.f32 %v1028_v18, %v1031_v23 }
 0x244   : > { %v4404_v25 = vpop.eup %4403  ;;  %v1033_v26 = vmul.f32 1.442695, %v1032_v24 }
 0x245   : > { %v956_v27 = vsel %vm924_vm2, %v4404_v25, 0.0 }
 0x246   : > { %4405 = vpow2.f32 %v1033_v26  ;;  %957 = vadd.xlane.f32.xlu2 %v956_v27 }
 0x249   : > { %v1082_v28 = vpop.permute.xlu2 %1081 }
 0x24a   : > { %3452 = vmatpush.xpose.msk.msrb.mxu1 %vm924_vm2, %v1082_v28 }
 0x24c   : > { %v4406_v29 = vpop.eup %4405 }
 0x24d   : > { %v1035_v30 = vsel %vm924_vm2, %v4406_v29, 0.0 }
 0x24e   : > { %1036 = vadd.xlane.f32.xlu0 %v1035_v30 }
 0x251   : > { %v1161_v49 = vpop.permute.xlu1 %1160 }
 0x25e   : > { %1079 = vrot.lane.b32.xlu2 %v4809_v7, %s4535_s12 }
 0x262   : > { %1158 = vrot.lane.b32.xlu0 %v4809_v7, %s4536_s3  ;;  %s5328_s3 = sld [smem:[#allocation9_spill]] }
 0x268   : > { %p4123_p1 = scmp.ne.s32.totalorder %s5328_s3, 1 }
 0x269   : > { %s5331_s30 = sld [smem:[#allocation30_spill]] (!%p4123_p1) }
 0x2b9   : > { %v958_v31 = vpop.xlane.xlu2 %957 }
 0x2ba   : > { %4407 = vrcp.f32 %v958_v31  ;;  %v970_v37 = vand.u32 2147483648, %v958_v31  ;;  %v968_v39 = vand.u32 2147483647, %v958_v31  ;;  %vm964_vm4 = vweird.f32 %v958_v31 }
 0x2bc   : > { %v971_v42 = vor.u32 1.1754944e-38, %v970_v37  ;;  %vm969_vm6 = vcmp.eq.f32.partialorder %v968_v39, 8.507059e+37 }
 0x2c0   : > { %v4408_v32 = vpop.eup %4407 }
 0x2c1   : > { %v960_v33 = vmul.f32 %v4408_v32, %v958_v31  ;;  %v1037_v34 = vpop.xlane.xlu0 %1036  ;;  %v1080_v35 = vpop.permute.xlu2 %1079  ;;  %vm965_vm3 = vweird.f32 %v4408_v32 }
 0x2c2   : > { %4409 = vrcp.f32 %v1037_v34  ;;  %3453 = vmatmul.msk.f32.vlgmr.msrb.gmra.mxu1 %vm924_vm2, %v1080_v35  ;;  %vm966_vm5 = vmor %vm964_vm4, %vm965_vm3  ;;  %v1049_v48 = vand.u32 2147483648, %v1037_v34  ;;  %v1047_v51 = vand.u32 2147483647, %v1037_v34  ;;  %vm1043_vm8 = vweird.f32 %v1037_v34 }
 0x2c3   : > { %v961_v36 = vsub.f32 1.0, %v960_v33 }
 0x2c4   : > { %v1050_v53 = vor.u32 1.1754944e-38, %v1049_v48  ;;  %vm1048_vm10 = vcmp.eq.f32.partialorder %v1047_v51, 8.507059e+37 }
 0x2c5   : > { %v962_v38 = vmul.f32 %v4408_v32, %v961_v36 }
 0x2c7   : > { %v963_v40 = vadd.f32 %v4408_v32, %v962_v38 }
 0x2c8   : > { %v4410_v41 = vpop.eup %4409 }
 0x2c9   : > { %v1039_v43 = vmul.f32 %v4410_v41, %v1037_v34  ;;  %v967_v44 = vsel %vm966_vm5, %v4408_v32, %v963_v40  ;;  %vm1044_vm7 = vweird.f32 %v4410_v41  ;;  %vm1250_vm5 = vcmask 130048  }
 0x2ca   : > { %v972_v45 = vsel %vm969_vm6, %v971_v42, %v967_v44  ;;  %vm1045_vm9 = vmor %vm1043_vm8, %vm1044_vm7  ;;  %v4143_v42 = vld [vmem:[%s5318_s17] sm:$0xff]  ;;  %vm1252_vm6 = vcmask 195584  }
 0x2cb   : > { %v1040_v46 = vsub.f32 1.0, %v1039_v43  ;;  %v973_v47 = vmul.f32 %v4404_v25, %v972_v45 }
 0x2cd   : > { %v1041_v50 = vmul.f32 %v4410_v41, %v1040_v46  ;;  %3448 = vmatmul.msk.f32.vlgmr.msra.gmra.mxu2 %vm924_vm2, %v973_v47 }
 0x2ce   : > { %3455 = vmatpush.xpose.msk.msra.mxu2 %vm924_vm2, %v1161_v49 }
 0x2cf   : > { %v1042_v52 = vadd.f32 %v4410_v41, %v1041_v50  ;;  %v4394_v50 = vld [vmem:[%s5320_s29] ss:$0 sm:$0xff]  ;;  %s5325_s29 = scalar_lea.vmem %s5247_s9, %s4726_s1 }
 0x2d1   : > { %v1046_v54 = vsel %vm1045_vm9, %v4410_v41, %v1042_v52  ;;  %v4144_v41 = vld [vmem:[%s5318_s17 + $0x8] sm:$0xff]  ;;  %s5323_s17 = scalar_lea.vmem %s5245_s7, %s4726_s1 }
 0x2d2   : > { %v1051_v55 = vsel %vm1048_vm10, %v1050_v53, %v1046_v54 }
 0x2d3   : > { %v1052_v56 = vmul.f32 %v4406_v29, %v1051_v55 }
 0x2d4   : > { %v1159_v57 = vpop.permute.xlu0 %1158 }
 0x2d5   : > { %3451 = vmatmul.msk.f32.vlgmr.msrb.gmra.mxu2 %vm924_vm2, %v1052_v56  ;;  %v4542_v56 = vmov 32.0  }
 0x2dd   : > { %3456 = vmatmul.msk.f32.vlgmr.msra.gmra.mxu2 %vm924_vm2, %v1159_v57 }
 0x33f   : > { %v1104_v58 = vpop.f32.mrf.mxu1 }
 0x340   : > { %v1107_v59 = vmul.f32 0.35355338, %v1104_v58 }
 0x342   : > { %v1108_v60 = vsel %vm924_vm2, %v1107_v59, -inf }
 0x343   : > { %1109 = vmax.xlane.f32.xlu2 %v1108_v60 }
 0x350   : > { %v4836_v61 = vpop.f32.mrf.mxu2 }
 0x358   : > { %v1076_v62 = vpop.f32.mrf.mxu2 }
 0x360   : > { %v1183_v63 = vpop.f32.mrf.mxu2 }
 0x361   : > { %v1186_v0 = vmul.f32 0.35355338, %v1183_v63 }
 0x363   : > { %v1187_v1 = vsel %vm924_vm2, %v1186_v0, -inf }
 0x364   : > { %1188 = vmax.xlane.f32.xlu1 %v1187_v1 }
 0x37d   : > { %1211 = vrot.lane.b32.xlu1 %v4809_v7, %s4537_s14  ;;  %s5322_s14 = scalar_lea.vmem %s5244_s6, %s4726_s1 }
 0x3b6   : > { %v1110_v2 = vpop.xlane.xlu2 %1109 }
 0x3b7   : > { %v1111_v4 = vsub.f32 %v1107_v59, %v1110_v2 }
 0x3b9   : > { %v1112_v5 = vmul.f32 1.442695, %v1111_v4 }
 0x3bb   : > { %4411 = vpow2.f32 %v1112_v5 }
 0x3c1   : > { %v4412_v6 = vpop.eup %4411 }
 0x3c2   : > { %v1114_v8 = vsel %vm924_vm2, %v4412_v6, 0.0 }
 0x3c3   : > { %1115 = vadd.xlane.f32.xlu0 %v1114_v8 }
 0x3d7   : > { %v1189_v9 = vpop.xlane.xlu1 %1188  ;;  %1238 = vrot.lane.b32.xlu0 %v1076_v62, %s4538_s26 }
 0x3d8   : > { %v1190_v10 = vsub.f32 %v1186_v0, %v1189_v9 }
 0x3da   : > { %v1191_v11 = vmul.f32 1.442695, %v1190_v10 }
 0x3dc   : > { %4413 = vpow2.f32 %v1191_v11 }
 0x3e2   : > { %v4414_v12 = vpop.eup %4413 }
 0x3e3   : > { %v1193_v13 = vsel %vm924_vm2, %v4414_v12, 0.0 }
 0x3e4   : > { %1194 = vadd.xlane.f32.xlu2 %v1193_v13 }
 0x3ef   : > { %v1212_v14 = vpop.permute.xlu1 %1211 }
 0x3f0   : > { %1232 = vmatpush.msra.mxu1 %v1212_v14  ;;  %v4395_v14 = vld [vmem:[%s5321_s18] ss:$0 sm:$0xff] }
 0x3fc   : > { %1132 = vrot.lane.b32.xlu2 %v4809_v7, %s4539_s10 }
 0x436   : > { %v1116_v15 = vpop.xlane.xlu0 %1115 }
 0x437   : > { %4415 = vrcp.f32 %v1116_v15  ;;  %v1128_v21 = vand.u32 2147483648, %v1116_v15  ;;  %vm1122_vm12 = vweird.f32 %v1116_v15  ;;  %v1126_v23 = vand.u32 2147483647, %v1116_v15 }
 0x439   : > { %v1129_v25 = vor.u32 1.1754944e-38, %v1128_v21  ;;  %vm1127_vm14 = vcmp.eq.f32.partialorder %v1126_v23, 8.507059e+37 }
 0x43d   : > { %v4416_v16 = vpop.eup %4415 }
 0x43e   : > { %v1118_v17 = vmul.f32 %v4416_v16, %v1116_v15  ;;  %vm1123_vm11 = vweird.f32 %v4416_v16 }
 0x43f   : > { %vm1124_vm13 = vmor %vm1122_vm12, %vm1123_vm11 }
 0x440   : > { %v1119_v18 = vsub.f32 1.0, %v1118_v17  ;;  %v4396_v17 = vld [vmem:[%s5322_s14] ss:$0 sm:$0xff] }
 0x442   : > { %v1120_v19 = vmul.f32 %v4416_v16, %v1119_v18 }
 0x444   : > { %v1121_v20 = vadd.f32 %v4416_v16, %v1120_v19  ;;  %v4397_v19 = vld [vmem:[%s5323_s17] ss:$0 sm:$0xff] }
 0x446   : > { %v1125_v24 = vsel %vm1124_vm13, %v4416_v16, %v1121_v20 }
 0x447   : > { %v1130_v26 = vsel %vm1127_vm14, %v1129_v25, %v1125_v24 }
 0x448   : > { %v1131_v29 = vmul.f32 %v4412_v6, %v1130_v26 }
 0x449   : > { %v1239_v43 = vpop.permute.xlu0 %1238 }
 0x44a   : > { %v1249_v45 = vsel %vm924_vm2, %v4836_v61, %v1239_v43  ;;  %v3471_v43 = vld [vmem:[%s4772_s15 + $0x40] sm:$0xf0] }
 0x457   : > { %v1195_v22 = vpop.xlane.xlu2 %1194 }
 0x458   : > { %4417 = vrcp.f32 %v1195_v22  ;;  %v1207_v31 = vand.u32 2147483648, %v1195_v22  ;;  %v1205_v33 = vand.u32 2147483647, %v1195_v22  ;;  %vm1201_vm0 = vweird.f32 %v1195_v22 }
 0x459   : > { %4419 = vrcp.f32 %v4542_v56 }
 0x45a   : > { %v1208_v35 = vor.u32 1.1754944e-38, %v1207_v31  ;;  %vm1206_vm4 = vcmp.eq.f32.partialorder %v1205_v33, 8.507059e+37  ;;  %v3535_v31 = vld [vmem:[%s4772_s15 + $0xc0] sm:$0xf0]  ;;  %v4170_v33 = vld [vmem:[%s4772_s15 + $0xc4] sm:$0xf0] }
 0x45e   : > { %v4418_v27 = vpop.eup %4417 }
 0x45f   : > { %v1197_v7 = vmul.f32 %v4418_v27, %v1195_v22  ;;  %v1133_v28 = vpop.permute.xlu2 %1132  ;;  %vm1202_vm15 = vweird.f32 %v4418_v27  ;;  %v4420_v57 = vpop.eup %4419 }
 0x460   : > { %1153 = vmatpush.msra.mxu3 %v1133_v28  ;;  %vm1203_vm3 = vmor %vm1201_vm0, %vm1202_vm15  ;;  %v1298_v58 = vmul.f32 32.0, %v4420_v57  ;;  %v4169_v28 = vld [vmem:[%s4772_s15 + $0xbc] sm:$0xf0] }
 0x461   : > { %v1198_v30 = vsub.f32 1.0, %v1197_v7  ;;  %3454 = vmatmul.msk.f32.vlgmr.msra.gmra.mxu3 %vm924_vm2, %v1131_v29  ;;  %v3533_v7 = vld [vmem:[%s4772_s15 + $0x80] sm:$0xf]  ;;  %v4161_v29 = vld [vmem:[%s4772_s15 + $0x84] sm:$0xf] }
 0x462   : > { %1284 = vmatpush.bf16.msrb.mxu3 %v4144_v41  ;;  %v1299_v59 = vsub.f32 1.0, %v1298_v58  ;;  %v4145_v41 = vld [vmem:[%s4772_s15 + $0x4] sm:$0xf]  ;;  %v3557_v58 = vld [vmem:[%s4772_s15 + $0x98] sm:$0xf] }
 0x463   : > { %v1199_v32 = vmul.f32 %v4418_v27, %v1198_v30  ;;  %v3534_v30 = vor.u32 %v4169_v28, %v3533_v7  ;;  %v3565_v7 = vld [vmem:[%s4772_s15 + $0xa0] sm:$0xf] }
 0x464   : > { %v1300_v60 = vmul.f32 %v4420_v57, %v1299_v59  ;;  %v4172_v59 = vld [vmem:[%s4772_s15 + $0xd4] sm:$0xf0]  ;;  %v4173_v28 = vld [vmem:[%s4772_s15 + $0xdc] sm:$0xf0] }
 0x465   : > { %v1200_v34 = vadd.f32 %v4418_v27, %v1199_v32  ;;  %v3541_v32 = vld [vmem:[%s4772_s15 + $0x88] sm:$0xf]  ;;  %1606 = vmatpush.bf16.msra.mxu0 %v3534_v30  ;;  %v3567_v30 = vld [vmem:[%s4772_s15 + $0xe0] sm:$0xf0] }
 0x466   : > { %1285 = vmatpush.bf16.msrb.mxu3 %v4143_v42  ;;  %v1301_v61 = vadd.f32 %v4420_v57, %v1300_v60 }
 0x467   : > { %v1204_v36 = vsel %vm1203_vm3, %v4418_v27, %v1200_v34  ;;  %v3538_v34 = vor.u32 %v4161_v29, %v3535_v31  ;;  %v4165_v29 = vld [vmem:[%s4772_s15 + $0xa4] sm:$0xf]  ;;  %v3573_v31 = vld [vmem:[%s4772_s15 + $0xa8] sm:$0xf] }
 0x468   : > { %v1209_v37 = vsel %vm1206_vm4, %v1208_v35, %v1204_v36  ;;  %v3542_v35 = vor.u32 %v4170_v33, %v3541_v32  ;;  %v4162_v36 = vld [vmem:[%s4772_s15 + $0x8c] sm:$0xf]  ;;  %v4174_v33 = vld [vmem:[%s4772_s15 + $0xe4] sm:$0xf0] }
 0x469   : > { %v1210_v38 = vmul.f32 %v4414_v12, %v1209_v37  ;;  %v3543_v37 = vld [vmem:[%s4772_s15 + $0xc8] sm:$0xf0]  ;;  %1619 = vmatpush.bf16.msrb.mxu2 %v3538_v34 }
 0x46a   : > { %1632 = vmatpush.bf16.msrb.mxu1 %v3542_v35  ;;  %v4166_v34 = vld [vmem:[%s4772_s15 + $0xac] sm:$0xf] }
 0x46b   : > { %3457 = vmatmul.msk.f32.vlgmr.msra.gmra.mxu1 %vm924_vm2, %v1210_v38  ;;  %vm1302_vm2 = vweird.f32 %v4420_v57  ;;  %v3546_v38 = vor.u32 %v4162_v36, %v3543_v37  ;;  %v3575_v35 = vld [vmem:[%s4772_s15 + $0xe8] sm:$0xf0]  ;;  %v3566_v36 = vor.u32 %v4173_v28, %v3565_v7  ;;  %v3570_v37 = vor.u32 %v4165_v29, %v3567_v30  ;;  %v4197_v7 = vld [vmem:[%s4787_s0 + $0xa0] sm:$0xff]  ;;  %v4180_v30 = vld [vmem:[%s4787_s0 + $0x18] sm:$0xff] }
 0x46c   : > { %v4857_v62 = vsel %vm1302_vm2, %v4420_v57, %v1301_v61  ;;  %v3551_v57 = vld [vmem:[%s4772_s15 + $0xd0] sm:$0xf0]  ;;  %v3558_v61 = vor.u32 %v4172_v59, %v3557_v58  ;;  %v4168_v58 = vld [vmem:[%s4772_s15 + $0xbc] sm:$0xf]  ;;  %v4189_v28 = vld [vmem:[%s4787_s0 + $0x60] sm:$0xff] }
 0x46d   : > { %1645 = vmatpush.bf16.msra.mxu3 %v3546_v38  ;;  %v3501_v38 = vld [vmem:[%s4772_s15 + $0x20] sm:$0xf]  ;;  %v3591_v59 = vld [vmem:[%s4772_s15 + $0xf8] sm:$0xf0] }
 0x46e   : > { %v4205_v29 = vld [vmem:[%s4787_s0 + $0xe0] sm:$0xff] }
 0x4e4   : > { %v1155_v39 = vpop.f32.mrf.mxu3 }
 0x4e5   : > { %1242 = vrot.lane.b32.xlu2 %v1155_v39, %s4540_s21  ;;  %v3469_v39 = vld [vmem:[%s4772_s15] sm:$0xf]  ;;  %s5330_s21 = sld [smem:[#allocation29_spill]] (!%p4123_p1) }
 0x4e8   : > { %v1234_v40 = vpop.f32.mrf.mxu1 }
 0x4e9   : > { %1246 = vrot.lane.b32.xlu0 %v1234_v40, %s4541_s28  ;;  %v4153_v40 = vld [vmem:[%s4772_s15 + $0x3c] sm:$0xf0] }
 0x4ea   : > { %v3470_v42 = vor.u32 %v4153_v40, %v3469_v39  ;;  %v4157_v39 = vld [vmem:[%s4772_s15 + $0x5c] sm:$0xf0]  ;;  %v3574_v40 = vor.u32 %v4174_v33, %v3573_v31  ;;  %v4196_v31 = vld [vmem:[%s4787_s0 + $0x98] sm:$0xff] }
 0x4eb   : > { %v4188_v33 = vld [vmem:[%s4787_s0 + $0x58] sm:$0xff] }
 0x4ec   : > { %1607 = vmatpush.bf16.msra.mxu0 %v3470_v42  ;;  %v4149_v42 = vld [vmem:[%s4772_s15 + $0x24] sm:$0xf] }
 0x53f   : > { %v1243_v44 = vpop.permute.xlu2 %1242 }
 0x540   : > { %v1251_v46 = vsel %vm1250_vm5, %v1249_v45, %v1243_v44  ;;  %v3477_v44 = vld [vmem:[%s4772_s15 + $0x8] sm:$0xf] }
 0x541   : > { %v4154_v45 = vld [vmem:[%s4772_s15 + $0x44] sm:$0xf0] }
 0x55b   : > { %v1247_v47 = vpop.permute.xlu0 %1246 }
 0x55c   : > { %v1253_v48 = vsel %vm1252_vm6, %v1251_v46, %v1247_v47  ;;  %v3474_v46 = vor.u32 %v4145_v41, %v3471_v43  ;;  %v3478_v47 = vor.u32 %v4154_v45, %v3477_v44  ;;  %v3578_v41 = vor.u32 %v4166_v34, %v3575_v35  ;;  %v3503_v43 = vld [vmem:[%s4772_s15 + $0x60] sm:$0xf0]  ;;  %v3509_v44 = vld [vmem:[%s4772_s15 + $0x28] sm:$0xf]  ;;  %v4204_v34 = vld [vmem:[%s4787_s0 + $0xd8] sm:$0xff] }
 0x55d   : > { %v1258_v49 = vpack.c.bf16 %v1253_v48, %v1253_v48  ;;  %v4146_v48 = vld [vmem:[%s4772_s15 + $0xc] sm:$0xf]  ;;  %v4158_v45 = vld [vmem:[%s4772_s15 + $0x64] sm:$0xf0]  ;;  %v4179_v35 = vld [vmem:[%s4787_s0 + $0x10] sm:$0xff] }
 0x55e   : > { %1620 = vmatpush.bf16.msrb.mxu2 %v3474_v46  ;;  %1633 = vmatpush.bf16.msrb.mxu1 %v3478_v47  ;;  %v4150_v46 = vld [vmem:[%s4772_s15 + $0x2c] sm:$0xf] }
 0x55f   : > { %3466 = vmatmul.msk.bf16.vlgmr.msrb.gmra.mxu3 %vm904_vm1, %v1258_v49  ;;  %v3479_v49 = vld [vmem:[%s4772_s15 + $0x48] sm:$0xf0] }
 0x560   : > { %v3511_v47 = vld [vmem:[%s4772_s15 + $0x68] sm:$0xf0] }
 0x562   : > { %1684 = vmatpush.bf16.msra.mxu1 %v3558_v61 }
 0x5e2   : > { %v1287_v51 = vpop.f32.mrf.mxu3 }
 0x5e3   : > { %v1288_v52 = vadd.f32 %v4394_v50, %v1287_v51  ;;  %v3482_v50 = vor.u32 %v4146_v48, %v3479_v49  ;;  %v3502_v48 = vor.u32 %v4157_v39, %v3501_v38  ;;  %v3506_v49 = vor.u32 %v4149_v42, %v3503_v43  ;;  %v4203_v38 = vld [vmem:[%s4787_s0 + $0xd0] sm:$0xff]  ;;  %v4178_v39 = vld [vmem:[%s4787_s0 + $0x8] sm:$0xff]  ;;  %v4177_v42 = vld [vmem:[%s4787_s0] sm:$0xff] }
 0x5e4   : > { %v4193_v43 = vld [vmem:[%s4787_s0 + $0x80] sm:$0xff] }
 0x5e5   : > { %v1291_v53 = vadd.f32 %v1288_v52, %v4799_v3  ;;  %1646 = vmatpush.bf16.msra.mxu3 %v3482_v50  ;;  %v3549_v52 = vld [vmem:[%s4772_s15 + $0x90] sm:$0xf]  ;;  %v3510_v50 = vor.u32 %v4158_v45, %v3509_v44  ;;  %v4216_v44 = vld [vmem:[%s4787_s0 + $0x138] sm:$0xff] }
 0x5e6   : > { %v4232_v45 = vld [vmem:[%s4787_s0 + $0x1b8] sm:$0xff] }
 0x5e7   : > { %v1294_v54 = vsel %vm904_vm1, %v1291_v53, 0.0 }
 0x5e8   : > { %1295 = vadd.xlane.f32.xlu1 %v1294_v54  ;;  %v4163_v54 = vld [vmem:[%s4772_s15 + $0x94] sm:$0xf] }
 0x5e9   : > { %v3554_v60 = vor.u32 %v4163_v54, %v3551_v57  ;;  %v4167_v54 = vld [vmem:[%s4772_s15 + $0xb4] sm:$0xf]  ;;  %v4176_v57 = vld [vmem:[%s4772_s15 + $0xf4] sm:$0xf0] }
 0x5ea   : > { %v1289_v55 = vpop.f32.mrf.mxu3 }
 0x5eb   : > { %1671 = vmatpush.bf16.msra.mxu2 %v3554_v60 }
 0x65b   : > { %v1296_v63 = vpop.xlane.xlu1 %1295 }
 0x65c   : > { %v1304_v0 = vmul.f32 %v4857_v62, %v1296_v63  ;;  %v4164_v63 = vld [vmem:[%s4772_s15 + $0x9c] sm:$0xf] }
 0x65e   : > { %v1305_v1 = vsub.f32 %v1291_v53, %v1304_v0  ;;  %v4171_v53 = vld [vmem:[%s4772_s15 + $0xcc] sm:$0xf0]  ;;  %v3559_v0 = vld [vmem:[%s4772_s15 + $0xd8] sm:$0xf0] }
 0x65f   : > { %v3550_v56 = vor.u32 %v4171_v53, %v3549_v52  ;;  %v3581_v52 = vld [vmem:[%s4772_s15 + $0xb0] sm:$0xf] }
 0x660   : > { %v1306_v2 = vmul.f32 %v1305_v1, %v1305_v1  ;;  %v4175_v53 = vld [vmem:[%s4772_s15 + $0xec] sm:$0xf0] }
 0x661   : > { %1658 = vmatpush.bf16.msrb.mxu0 %v3550_v56  ;;  %v3589_v56 = vld [vmem:[%s4772_s15 + $0xb8] sm:$0xf]  ;;  %v3582_v60 = vor.u32 %v4175_v53, %v3581_v52  ;;  %v4223_v52 = vld [vmem:[%s4787_s0 + $0x170] sm:$0xff] }
 0x662   : > { %v1307_v3 = vsel %vm904_vm1, %v1306_v2, 0.0  ;;  %v4239_v53 = vld [vmem:[%s4787_s0 + $0x1f0] sm:$0xff] }
 0x663   : > { %1308 = vadd.xlane.f32.xlu2 %v1307_v3  ;;  %v3562_v3 = vor.u32 %v4164_v63, %v3559_v0  ;;  %v3517_v63 = vld [vmem:[%s4772_s15 + $0x30] sm:$0xf] }
 0x664   : > { %v4159_v0 = vld [vmem:[%s4772_s15 + $0x6c] sm:$0xf0] }
 0x665   : > { %1697 = vmatpush.bf16.msrb.mxu3 %v3562_v3  ;;  %v4151_v3 = vld [vmem:[%s4772_s15 + $0x34] sm:$0xf] }
 0x6d6   : > { %v1309_v4 = vpop.xlane.xlu2 %1308 }
 0x6d7   : > { %v1310_v5 = vmul.f32 %v1309_v4, %v4857_v62  ;;  %v4155_v4 = vld [vmem:[%s4772_s15 + $0x4c] sm:$0xf0] }
 0x6d9   : > { %v1311_v6 = vadd.f32 1e-05, %v1310_v5  ;;  %v4147_v5 = vld [vmem:[%s4772_s15 + $0x14] sm:$0xf] }
 0x6db   : > { %4421 = vrsqrt.f32 %v1311_v6  ;;  %vm1318_vm8 = vweird.f32 %v1311_v6 }
 0x6e1   : > { %v4422_v8 = vpop.eup %4421 }
 0x6e2   : > { %v1313_v9 = vmul.f32 %v4422_v8, %v1311_v6  ;;  %vm1319_vm7 = vweird.f32 %v4422_v8 }
 0x6e3   : > { %vm1320_vm9 = vmor %vm1318_vm8, %vm1319_vm7 }
 0x6e4   : > { %v1314_v10 = vmul.f32 %v4422_v8, %v1313_v9  ;;  %v3493_v9 = vld [vmem:[%s4772_s15 + $0x18] sm:$0xf] }
 0x6e6   : > { %v1315_v11 = vmul.f32 0.5, %v1314_v10  ;;  %v4156_v10 = vld [vmem:[%s4772_s15 + $0x54] sm:$0xf0] }
 0x6e8   : > { %v1316_v12 = vsub.f32 1.5, %v1315_v11 }
 0x6ea   : > { %v1317_v13 = vmul.f32 %v4422_v8, %v1316_v12  ;;  %v3494_v12 = vor.u32 %v4156_v10, %v3493_v9  ;;  %v3527_v9 = vld [vmem:[%s4772_s15 + $0x78] sm:$0xf0]  ;;  %v3518_v10 = vor.u32 %v4159_v0, %v3517_v63 }
 0x6eb   : > { %v4212_v63 = vld [vmem:[%s4787_s0 + $0x118] sm:$0xff] }
 0x6ec   : > { %v1321_v15 = vsel %vm1320_vm9, %v4422_v8, %v1317_v13  ;;  %v3487_v8 = vld [vmem:[%s4772_s15 + $0x50] sm:$0xf0]  ;;  %v4148_v13 = vld [vmem:[%s4772_s15 + $0x1c] sm:$0xf]  ;;  %1685 = vmatpush.bf16.msra.mxu1 %v3494_v12 }
 0x6ed   : > { %v1322_v16 = vmul.f32 %v1321_v15, %v1305_v1  ;;  %v3485_v1 = vld [vmem:[%s4772_s15 + $0x10] sm:$0xf]  ;;  %v3490_v11 = vor.u32 %v4147_v5, %v3487_v8  ;;  %v3525_v5 = vld [vmem:[%s4772_s15 + $0x38] sm:$0xf]  ;;  %v4152_v8 = vld [vmem:[%s4772_s15 + $0x3c] sm:$0xf] }
 0x6ee   : > { %v3486_v6 = vor.u32 %v4155_v4, %v3485_v1  ;;  %v3590_v1 = vor.u32 %v4176_v57, %v3589_v56  ;;  %v3519_v4 = vld [vmem:[%s4772_s15 + $0x70] sm:$0xf0]  ;;  %v4222_v56 = vld [vmem:[%s4787_s0 + $0x168] sm:$0xff]  ;;  %v4228_v0 = vld [vmem:[%s4787_s0 + $0x198] sm:$0xff] }
 0x6ef   : > { %v1326_v18 = vmul.f32 %v4395_v14, %v1322_v16  ;;  %v3495_v14 = vld [vmem:[%s4772_s15 + $0x58] sm:$0xf0]  ;;  %1672 = vmatpush.bf16.msra.mxu2 %v3490_v11  ;;  %v3522_v11 = vor.u32 %v4151_v3, %v3519_v4  ;;  %v4238_v57 = vld [vmem:[%s4787_s0 + $0x1e8] sm:$0xff] }
 0x6f0   : > { %v3498_v15 = vor.u32 %v4148_v13, %v3495_v14  ;;  %1659 = vmatpush.bf16.msrb.mxu0 %v3486_v6  ;;  %v4160_v6 = vld [vmem:[%s4772_s15 + $0x74] sm:$0xf0]  ;;  %v3530_v13 = vor.u32 %v4152_v8, %v3527_v9  ;;  %v4219_v8 = vld [vmem:[%s4787_s0 + $0x150] sm:$0xff] }
 0x6f1   : > { %v1330_v20 = vadd.f32 %v4396_v17, %v1326_v18  ;;  %v3526_v12 = vor.u32 %v4160_v6, %v3525_v5  ;;  %v4184_v14 = vld [vmem:[%s4787_s0 + $0x38] sm:$0xff]  ;;  %v4210_v5 = vld [vmem:[%s4787_s0 + $0x108] sm:$0xff]  ;;  %v4235_v9 = vld [vmem:[%s4787_s0 + $0x1d0] sm:$0xff] }
 0x6f2   : > { %1698 = vmatpush.bf16.msrb.mxu3 %v3498_v15  ;;  %v4200_v15 = vld [vmem:[%s4787_s0 + $0xb8] sm:$0xff]  ;;  %v4226_v6 = vld [vmem:[%s4787_s0 + $0x188] sm:$0xff] }
 0x6f3   : > { %v1335_v21 = vadd.f32 %v4397_v19, %v1330_v20  ;;  %v4220_v3 = vld [vmem:[%s4787_s0 + $0x158] sm:$0xff] }
 0x6f4   : > { %v4236_v4 = vld [vmem:[%s4787_s0 + $0x1d8] sm:$0xff] }
 0x6f5   : > { %v1338_v22 = vsel %vm904_vm1, %v1335_v21, 0.0 }
 0x6f6   : > { %1339 = vadd.xlane.f32.xlu0 %v1338_v22  ;;  %v4398_v22 = vld [vmem:[%s5324_s23] ss:$0 sm:$0xff] }
 0x769   : > { %v1340_v23 = vpop.xlane.xlu0 %1339 }
 0x76a   : > { %v1341_v24 = vmul.f32 %v1340_v23, %v4857_v62 }
 0x76c   : > { %v4879_v25 = vsub.f32 %v1335_v21, %v1341_v24  ;;  %v4399_v24 = vld [vmem:[%s5325_s29] ss:$0 sm:$0xff] }
 0x76e   : > { %v1343_v26 = vmul.f32 %v4879_v25, %v4879_v25 }
 0x770   : > { %v1344_v27 = vsel %vm904_vm1, %v1343_v26, 0.0 }
 0x771   : > { %1345 = vadd.xlane.f32.xlu1 %v1344_v27 }
 0x7e4   : > { %v1346_v51 = vpop.xlane.xlu1 %1345 }
 0x7e5   : > { %v1347_v55 = vmul.f32 %v1346_v51, %v4857_v62  ;;  %v3514_v51 = vor.u32 %v4150_v46, %v3511_v47  ;;  %v4185_v46 = vld [vmem:[%s4787_s0 + $0x40] sm:$0xff] }
 0x7e6   : > { %v4201_v47 = vld [vmem:[%s4787_s0 + $0xc0] sm:$0xff] }
 0x7e7   : > { %v1348_v2 = vadd.f32 1e-05, %v1347_v55  ;;  %v3583_v55 = vld [vmem:[%s4772_s15 + $0xf0] sm:$0xf0] }
 0x7e8   : > { %v3586_v61 = vor.u32 %v4167_v54, %v3583_v55  ;;  %v4214_v54 = vld [vmem:[%s4787_s0 + $0x128] sm:$0xff] }
 0x7e9   : > { %4423 = vrsqrt.f32 %v1348_v2  ;;  %vm1355_vm11 = vweird.f32 %v1348_v2  ;;  %v4230_v55 = vld [vmem:[%s4787_s0 + $0x1a8] sm:$0xff] }
 0x7ef   : > { %v4424_v16 = vpop.eup %4423 }
 0x7f0   : > { %v1350_v17 = vmul.f32 %v4424_v16, %v1348_v2  ;;  %vm1356_vm10 = vweird.f32 %v4424_v16  ;;  %v3594_v2 = vor.u32 %v4168_v58, %v3591_v59  ;;  %v4213_v58 = vld [vmem:[%s4787_s0 + $0x120] sm:$0xff] }
 0x7f1   : > { %vm1357_vm12 = vmor %vm1355_vm11, %vm1356_vm10  ;;  %v4229_v59 = vld [vmem:[%s4787_s0 + $0x1a0] sm:$0xff] }
 0x7f2   : > { %v1351_v18 = vmul.f32 %v4424_v16, %v1350_v17  ;;  %v4208_v17 = vld [vmem:[%s4787_s0 + $0xf8] sm:$0xff] }
 0x7f4   : > { %v1352_v19 = vmul.f32 0.5, %v1351_v18  ;;  %v4183_v18 = vld [vmem:[%s4787_s0 + $0x30] sm:$0xff] }
 0x7f6   : > { %v1353_v20 = vsub.f32 1.5, %v1352_v19  ;;  %v4199_v19 = vld [vmem:[%s4787_s0 + $0xb0] sm:$0xff] }
 0x7f8   : > { %v1354_v21 = vmul.f32 %v4424_v16, %v1353_v20  ;;  %v4191_v20 = vld [vmem:[%s4787_s0 + $0x70] sm:$0xff] }
 0x7fa   : > { %v1358_v23 = vsel %vm1357_vm12, %v4424_v16, %v1354_v21  ;;  %v4192_v16 = vld [vmem:[%s4787_s0 + $0x78] sm:$0xff]  ;;  %v4207_v21 = vld [vmem:[%s4787_s0 + $0xf0] sm:$0xff] }
 0x7fb   : > { %v1359_v26 = vmul.f32 %v1358_v23, %v4879_v25  ;;  %v4198_v23 = vld [vmem:[%s4787_s0 + $0xa8] sm:$0xff] }
 0x7fd   : > { %v1363_v27 = vmul.f32 %v4398_v22, %v1359_v26  ;;  %v4182_v22 = vld [vmem:[%s4787_s0 + $0x28] sm:$0xff] }
 0x7fe   : > { %v4206_v26 = vld [vmem:[%s4787_s0 + $0xe8] sm:$0xff] }
 0x7ff   : > { %v4933_v32 = vadd.f32 %v4399_v24, %v1363_v27  ;;  %v4190_v24 = vld [vmem:[%s4787_s0 + $0x68] sm:$0xff]  ;;  %v4181_v27 = vld [vmem:[%s4787_s0 + $0x20] sm:$0xff] }
 0x801   : > { %v4940_v25 = vpack.c.bf16 %v4933_v32, %v4933_v32 }
 0x803   : > { %3595 = vmatmul.msk.bf16.vlgmr.msra.gmra.mxu0 %vm904_vm1, %v4940_v25  ;;  %3596 = vmatmul.msk.bf16.vlgmr.msrb.gmra.mxu2 %vm904_vm1, %v4940_v25 }
 0x804   : > { %3597 = vmatmul.msk.bf16.vlgmr.msrb.gmra.mxu1 %vm904_vm1, %v4940_v25  ;;  %3598 = vmatmul.msk.bf16.vlgmr.msra.gmra.mxu3 %vm904_vm1, %v4940_v25 }
 0x805   : > { %1710 = vmatpush.bf16.msra.mxu0 %v3566_v36  ;;  %1723 = vmatpush.bf16.msrb.mxu2 %v3570_v37  ;;  %v4195_v36 = vld [vmem:[%s4787_s0 + $0x90] sm:$0xff] }
 0x806   : > { %1736 = vmatpush.bf16.msrb.mxu1 %v3574_v40  ;;  %1749 = vmatpush.bf16.msra.mxu3 %v3578_v41  ;;  %v4187_v37 = vld [vmem:[%s4787_s0 + $0x50] sm:$0xff]  ;;  %v4186_v40 = vld [vmem:[%s4787_s0 + $0x48] sm:$0xff] }
 0x807   : > { %v4202_v41 = vld [vmem:[%s4787_s0 + $0xc8] sm:$0xff] }
 0x809   : > { %1711 = vmatpush.bf16.msra.mxu0 %v3502_v48  ;;  %1724 = vmatpush.bf16.msrb.mxu2 %v3506_v49  ;;  %v4224_v48 = vld [vmem:[%s4787_s0 + $0x178] sm:$0xff] }
 0x80a   : > { %1737 = vmatpush.bf16.msrb.mxu1 %v3510_v50  ;;  %1750 = vmatpush.bf16.msra.mxu3 %v3514_v51  ;;  %v4240_v49 = vld [vmem:[%s4787_s0 + $0x1f8] sm:$0xff]  ;;  %v4215_v50 = vld [vmem:[%s4787_s0 + $0x130] sm:$0xff] }
 0x80b   : > { %v4231_v51 = vld [vmem:[%s4787_s0 + $0x1b0] sm:$0xff] }
 0x813   : > { %3599 = vmatmul.msk.bf16.vlgmr.msrb.gmra.mxu0 %vm904_vm1, %v4940_v25  ;;  %3600 = vmatmul.msk.bf16.vlgmr.msra.gmra.mxu2 %vm904_vm1, %v4940_v25 }
 0x814   : > { %3601 = vmatmul.msk.bf16.vlgmr.msra.gmra.mxu1 %vm904_vm1, %v4940_v25  ;;  %3602 = vmatmul.msk.bf16.vlgmr.msrb.gmra.mxu3 %vm904_vm1, %v4940_v25 }
 0x815   : > { %1762 = vmatpush.bf16.msrb.mxu0 %v3582_v60  ;;  %1775 = vmatpush.bf16.msra.mxu2 %v3586_v61  ;;  %v4221_v60 = vld [vmem:[%s4787_s0 + $0x160] sm:$0xff] }
 0x816   : > { %1788 = vmatpush.bf16.msra.mxu1 %v3590_v1  ;;  %1801 = vmatpush.bf16.msrb.mxu3 %v3594_v2  ;;  %v4237_v61 = vld [vmem:[%s4787_s0 + $0x1e0] sm:$0xff]  ;;  %v4211_v1 = vld [vmem:[%s4787_s0 + $0x110] sm:$0xff] }
 0x817   : > { %v4227_v2 = vld [vmem:[%s4787_s0 + $0x190] sm:$0xff] }
 0x819   : > { %1763 = vmatpush.bf16.msrb.mxu0 %v3518_v10  ;;  %1776 = vmatpush.bf16.msra.mxu2 %v3522_v11  ;;  %v4209_v10 = vld [vmem:[%s4787_s0 + $0x100] sm:$0xff] }
 0x81a   : > { %1789 = vmatpush.bf16.msra.mxu1 %v3526_v12  ;;  %1802 = vmatpush.bf16.msrb.mxu3 %v3530_v13  ;;  %v4225_v11 = vld [vmem:[%s4787_s0 + $0x180] sm:$0xff]  ;;  %v4218_v12 = vld [vmem:[%s4787_s0 + $0x148] sm:$0xff] }
 0x81b   : > { %v4234_v13 = vld [vmem:[%s4787_s0 + $0x1c8] sm:$0xff] }
 0x823   : > { %3603 = vmatmul.msk.bf16.vlgmr.msra.gmra.mxu0 %vm904_vm1, %v4940_v25  ;;  %3604 = vmatmul.msk.bf16.vlgmr.msrb.gmra.mxu2 %vm904_vm1, %v4940_v25 }
 0x824   : > { %3605 = vmatmul.msk.bf16.vlgmr.msrb.gmra.mxu1 %vm904_vm1, %v4940_v25  ;;  %3606 = vmatmul.msk.bf16.vlgmr.msra.gmra.mxu3 %vm904_vm1, %v4940_v25 }
 0x825   : > { %2868 = vmatpush.bf16.msra.mxu0 %v4184_v14  ;;  %2894 = vmatpush.bf16.msrb.mxu1 %v4200_v15  ;;  %v4217_v14 = vld [vmem:[%s4787_s0 + $0x140] sm:$0xff] }
 0x826   : > { %2881 = vmatpush.bf16.msrb.mxu2 %v4192_v16  ;;  %2907 = vmatpush.bf16.msra.mxu3 %v4208_v17  ;;  %v4233_v15 = vld [vmem:[%s4787_s0 + $0x1c0] sm:$0xff] }
 0x827   : > { %v5063_v16 = vld [vmem:[%s4777_s22] sm:$0xff] }
 0x828   : > { %v1405_v17 = vperm.slane %v5063_v16, 0 }
 0x829   : > { %2869 = vmatpush.bf16.msra.mxu0 %v4183_v18  ;;  %2895 = vmatpush.bf16.msrb.mxu1 %v4199_v19  ;;  %v1407_v18 = vperm.slane %v5063_v16, 2 }
 0x82a   : > { %2882 = vmatpush.bf16.msrb.mxu2 %v4191_v20  ;;  %2908 = vmatpush.bf16.msra.mxu3 %v4207_v21 }
 0x82d   : > { %2870 = vmatpush.bf16.msra.mxu0 %v4182_v22  ;;  %2896 = vmatpush.bf16.msrb.mxu1 %v4198_v23 }
 0x82e   : > { %2883 = vmatpush.bf16.msrb.mxu2 %v4190_v24  ;;  %2909 = vmatpush.bf16.msra.mxu3 %v4206_v26  ;;  %v1406_v24 = vperm.slane %v5063_v16, 1 }
 0x831   : > { %2871 = vmatpush.bf16.msra.mxu0 %v4181_v27  ;;  %2897 = vmatpush.bf16.msrb.mxu1 %v4197_v7  ;;  %v1408_v27 = vperm.slane %v5063_v16, 3  ;;  %v4248_v7 = vld [vmem:[%s4787_s0 + $0x238] sm:$0xff] }
 0x832   : > { %2884 = vmatpush.bf16.msrb.mxu2 %v4189_v28  ;;  %2910 = vmatpush.bf16.msra.mxu3 %v4205_v29  ;;  %v4264_v29 = vld [vmem:[%s4787_s0 + $0x2b8] sm:$0xff] }
 0x833   : > { %3607 = vmatmul.msk.bf16.vlgmr.msrb.gmra.mxu0 %vm904_vm1, %v4940_v25  ;;  %3608 = vmatmul.msk.bf16.vlgmr.msra.gmra.mxu2 %vm904_vm1, %v4940_v25 }
 0x834   : > { %3609 = vmatmul.msk.bf16.vlgmr.msra.gmra.mxu1 %vm904_vm1, %v4940_v25  ;;  %3610 = vmatmul.msk.bf16.vlgmr.msrb.gmra.mxu3 %vm904_vm1, %v4940_v25  ;;  %v4194_v25 = vld [vmem:[%s4787_s0 + $0x88] sm:$0xff] }
 0x835   : > { %2872 = vmatpush.bf16.msra.mxu0 %v4180_v30  ;;  %2898 = vmatpush.bf16.msrb.mxu1 %v4196_v31 }
 0x836   : > { %2885 = vmatpush.bf16.msrb.mxu2 %v4188_v33  ;;  %2911 = vmatpush.bf16.msra.mxu3 %v4204_v34 }
 0x839   : > { %2873 = vmatpush.bf16.msra.mxu0 %v4179_v35  ;;  %2899 = vmatpush.bf16.msrb.mxu1 %v4195_v36 }
 0x83a   : > { %2886 = vmatpush.bf16.msrb.mxu2 %v4187_v37  ;;  %2912 = vmatpush.bf16.msra.mxu3 %v4203_v38  ;;  %v4247_v37 = vld [vmem:[%s4787_s0 + $0x230] sm:$0xff] }
 0x83d   : > { %2874 = vmatpush.bf16.msra.mxu0 %v4178_v39  ;;  %2900 = vmatpush.bf16.msrb.mxu1 %v4194_v25  ;;  %v4263_v25 = vld [vmem:[%s4787_s0 + $0x2b0] sm:$0xff] }
 0x83e   : > { %2887 = vmatpush.bf16.msrb.mxu2 %v4186_v40  ;;  %2913 = vmatpush.bf16.msra.mxu3 %v4202_v41  ;;  %v4256_v41 = vld [vmem:[%s4787_s0 + $0x278] sm:$0xff] }
 0x841   : > { %2875 = vmatpush.bf16.msra.mxu0 %v4177_v42  ;;  %2901 = vmatpush.bf16.msrb.mxu1 %v4193_v43  ;;  %v4272_v43 = vld [vmem:[%s4787_s0 + $0x2f8] sm:$0xff] }
 0x842   : > { %2888 = vmatpush.bf16.msrb.mxu2 %v4185_v46  ;;  %2914 = vmatpush.bf16.msra.mxu3 %v4201_v47  ;;  %v4262_v46 = vld [vmem:[%s4787_s0 + $0x2a8] sm:$0xff]  ;;  %v1409_v47 = vperm.slane %v5063_v16, 4 }
 0x845   : > { %2920 = vmatpush.bf16.msrb.mxu0 %v4216_v44  ;;  %2946 = vmatpush.bf16.msra.mxu1 %v4232_v45  ;;  %v4246_v45 = vld [vmem:[%s4787_s0 + $0x228] sm:$0xff] }
 0x846   : > { %2933 = vmatpush.bf16.msra.mxu2 %v4224_v48  ;;  %2959 = vmatpush.bf16.msrb.mxu3 %v4240_v49  ;;  %v1411_v49 = vperm.slane %v5063_v16, 6 }
 0x849   : > { %2921 = vmatpush.bf16.msrb.mxu0 %v4215_v50  ;;  %2947 = vmatpush.bf16.msra.mxu1 %v4231_v51  ;;  %v4255_v50 = vld [vmem:[%s4787_s0 + $0x270] sm:$0xff] }
 0x84a   : > { %2934 = vmatpush.bf16.msra.mxu2 %v4223_v52  ;;  %2960 = vmatpush.bf16.msrb.mxu3 %v4239_v53  ;;  %v4271_v52 = vld [vmem:[%s4787_s0 + $0x2f0] sm:$0xff] }
 0x84d   : > { %2922 = vmatpush.bf16.msrb.mxu0 %v4214_v54  ;;  %2948 = vmatpush.bf16.msra.mxu1 %v4230_v55  ;;  %v4245_v54 = vld [vmem:[%s4787_s0 + $0x220] sm:$0xff] }
 0x84e   : > { %2935 = vmatpush.bf16.msra.mxu2 %v4222_v56  ;;  %2961 = vmatpush.bf16.msrb.mxu3 %v4238_v57  ;;  %v4261_v57 = vld [vmem:[%s4787_s0 + $0x2a0] sm:$0xff] }
 0x851   : > { %2923 = vmatpush.bf16.msrb.mxu0 %v4213_v58  ;;  %2949 = vmatpush.bf16.msra.mxu1 %v4229_v59  ;;  %v4254_v59 = vld [vmem:[%s4787_s0 + $0x268] sm:$0xff] }
 0x852   : > { %2936 = vmatpush.bf16.msra.mxu2 %v4221_v60  ;;  %2962 = vmatpush.bf16.msrb.mxu3 %v4237_v61  ;;  %v4270_v61 = vld [vmem:[%s4787_s0 + $0x2e8] sm:$0xff] }
 0x855   : > { %2924 = vmatpush.bf16.msrb.mxu0 %v4212_v63  ;;  %2950 = vmatpush.bf16.msra.mxu1 %v4228_v0  ;;  %v1410_v63 = vperm.slane %v5063_v16, 5 }
 0x856   : > { %2937 = vmatpush.bf16.msra.mxu2 %v4220_v3  ;;  %2963 = vmatpush.bf16.msrb.mxu3 %v4236_v4  ;;  %v4260_v4 = vld [vmem:[%s4787_s0 + $0x298] sm:$0xff] }
 0x859   : > { %2925 = vmatpush.bf16.msrb.mxu0 %v4211_v1  ;;  %2951 = vmatpush.bf16.msra.mxu1 %v4227_v2  ;;  %v1412_v1 = vperm.slane %v5063_v16, 7  ;;  %v4244_v2 = vld [vmem:[%s4787_s0 + $0x218] sm:$0xff] }
 0x85a   : > { %2938 = vmatpush.bf16.msra.mxu2 %v4219_v8  ;;  %2964 = vmatpush.bf16.msrb.mxu3 %v4235_v9  ;;  %v4253_v8 = vld [vmem:[%s4787_s0 + $0x260] sm:$0xff] }
 0x85d   : > { %2926 = vmatpush.bf16.msrb.mxu0 %v4210_v5  ;;  %2952 = vmatpush.bf16.msra.mxu1 %v4226_v6 }
 0x85e   : > { %2939 = vmatpush.bf16.msra.mxu2 %v4218_v12  ;;  %2965 = vmatpush.bf16.msrb.mxu3 %v4234_v13 }
 0x861   : > { %2927 = vmatpush.bf16.msrb.mxu0 %v4209_v10  ;;  %2953 = vmatpush.bf16.msra.mxu1 %v4225_v11  ;;  %v4269_v11 = vld [vmem:[%s4787_s0 + $0x2e0] sm:$0xff] }
 0x862   : > { %2940 = vmatpush.bf16.msra.mxu2 %v4217_v14  ;;  %2966 = vmatpush.bf16.msrb.mxu3 %v4233_v15  ;;  %v4243_v14 = vld [vmem:[%s4787_s0 + $0x210] sm:$0xff] }
 0x880   : > { %v1609_v19 = vpop.f32.mrf.mxu0 }
 0x881   : > { %v1610_v20 = vadd.f32 %v1609_v19, %v1405_v17  ;;  %v1635_v21 = vpop.f32.mrf.mxu1  ;;  %v4259_v17 = vld [vmem:[%s4787_s0 + $0x290] sm:$0xff]  ;;  %v4252_v19 = vld [vmem:[%s4787_s0 + $0x258] sm:$0xff] }
 0x882   : > { %v1636_v22 = vadd.f32 %v1635_v21, %v1407_v18 }
 0x883   : > { %v1808_v23 = vmax.f32 %v1610_v20, 0.0  ;;  %v5095_v20 = vld [vmem:[%s4777_s22 + $0x8] sm:$0xff]  ;;  %s5332_s22 = sld [smem:[#allocation32_spill]] (!%p4123_p1) }
 0x884   : > { %v1810_v26 = vmax.f32 %v1636_v22, 0.0  ;;  %v4268_v22 = vld [vmem:[%s4787_s0 + $0x2d8] sm:$0xff] }
 0x885   : > { %v2080_v28 = vpack.c.bf16 %v1808_v23, %v1808_v23 }
 0x886   : > { %v2082_v30 = vpack.c.bf16 %v1810_v26, %v1810_v26  ;;  %v1622_v31 = vpop.f32.mrf.mxu2  ;;  %v4258_v26 = vld [vmem:[%s4787_s0 + $0x288] sm:$0xff] }
 0x887   : > { %v1623_v33 = vadd.f32 %v1622_v31, %v1406_v24  ;;  %v1648_v34 = vpop.f32.mrf.mxu3  ;;  %2876 = vmatmul.bf16.vlgmr.msra.gmra.mxu0 %v2080_v28  ;;  %v4242_v24 = vld [vmem:[%s4787_s0 + $0x208] sm:$0xff]  ;;  %v1415_v28 = vperm.slane %v5095_v20, 2  ;;  %v4267_v31 = vld [vmem:[%s4787_s0 + $0x2d0] sm:$0xff] }
 0x888   : > { %v1649_v35 = vadd.f32 %v1648_v34, %v1408_v27  ;;  %2902 = vmatmul.bf16.vlgmr.msrb.gmra.mxu1 %v2082_v30  ;;  %2972 = vmatpush.bf16.msra.mxu0 %v4248_v7  ;;  %v1611_v36 = vpop.f32.mrf.mxu0  ;;  %v1413_v27 = vperm.slane %v5095_v20, 0  ;;  %v4241_v34 = vld [vmem:[%s4787_s0 + $0x200] sm:$0xff] }
 0x889   : > { %v1809_v38 = vmax.f32 %v1623_v33, 0.0  ;;  %2998 = vmatpush.bf16.msrb.mxu1 %v4264_v29  ;;  %v1637_v39 = vpop.f32.mrf.mxu1  ;;  %v4251_v29 = vld [vmem:[%s4787_s0 + $0x250] sm:$0xff] }
 0x88a   : > { %v1811_v40 = vmax.f32 %v1649_v35, 0.0 }
 0x88b   : > { %v2081_v42 = vpack.c.bf16 %v1809_v38, %v1809_v38  ;;  %v4280_v38 = vld [vmem:[%s4787_s0 + $0x338] sm:$0xff] }
 0x88c   : > { %v2083_v44 = vpack.c.bf16 %v1811_v40, %v1811_v40  ;;  %2973 = vmatpush.bf16.msra.mxu0 %v4247_v37  ;;  %v4257_v37 = vld [vmem:[%s4787_s0 + $0x280] sm:$0xff]  ;;  %v4250_v40 = vld [vmem:[%s4787_s0 + $0x248] sm:$0xff] }
 0x88d   : > { %2999 = vmatpush.bf16.msrb.mxu1 %v4263_v25  ;;  %2889 = vmatmul.bf16.vlgmr.msrb.gmra.mxu2 %v2081_v42  ;;  %v4296_v25 = vld [vmem:[%s4787_s0 + $0x3b8] sm:$0xff]  ;;  %v4266_v42 = vld [vmem:[%s4787_s0 + $0x2c8] sm:$0xff] }
 0x88e   : > { %2915 = vmatmul.bf16.vlgmr.msra.gmra.mxu3 %v2083_v44  ;;  %2985 = vmatpush.bf16.msrb.mxu2 %v4256_v41  ;;  %v1624_v48 = vpop.f32.mrf.mxu2 }
 0x88f   : > { %3011 = vmatpush.bf16.msra.mxu3 %v4272_v43  ;;  %v1650_v51 = vpop.f32.mrf.mxu3  ;;  %v1414_v43 = vperm.slane %v5095_v20, 1 }
 0x890   : > { %2974 = vmatpush.bf16.msra.mxu0 %v4246_v45  ;;  %v1661_v53 = vpop.f32.mrf.mxu0  ;;  %v1416_v45 = vperm.slane %v5095_v20, 3  ;;  %v4249_v51 = vld [vmem:[%s4787_s0 + $0x240] sm:$0xff] }
 0x891   : > { %3000 = vmatpush.bf16.msrb.mxu1 %v4262_v46  ;;  %v1662_v55 = vadd.f32 %v1661_v53, %v1409_v47  ;;  %v1687_v56 = vpop.f32.mrf.mxu1  ;;  %v4279_v47 = vld [vmem:[%s4787_s0 + $0x330] sm:$0xff] }
 0x892   : > { %v1688_v58 = vadd.f32 %v1687_v56, %v1411_v49  ;;  %2986 = vmatpush.bf16.msrb.mxu2 %v4255_v50  ;;  %v4295_v50 = vld [vmem:[%s4787_s0 + $0x3b0] sm:$0xff] }
 0x893   : > { %v1812_v60 = vmax.f32 %v1662_v55, 0.0  ;;  %3012 = vmatpush.bf16.msra.mxu3 %v4271_v52  ;;  %v4288_v55 = vld [vmem:[%s4787_s0 + $0x378] sm:$0xff] }
 0x894   : > { %v1814_v0 = vmax.f32 %v1688_v58, 0.0  ;;  %2975 = vmatpush.bf16.msra.mxu0 %v4245_v54  ;;  %v4265_v54 = vld [vmem:[%s4787_s0 + $0x2c0] sm:$0xff]  ;;  %v4304_v58 = vld [vmem:[%s4787_s0 + $0x3f8] sm:$0xff] }
 0x895   : > { %v2084_v3 = vpack.c.bf16 %v1812_v60, %v1812_v60  ;;  %3001 = vmatpush.bf16.msrb.mxu1 %v4261_v57 }
 0x896   : > { %v2086_v5 = vpack.c.bf16 %v1814_v0, %v1814_v0  ;;  %2987 = vmatpush.bf16.msrb.mxu2 %v4254_v59  ;;  %v1674_v6 = vpop.f32.mrf.mxu2  ;;  %v4294_v0 = vld [vmem:[%s4787_s0 + $0x3a8] sm:$0xff] }
 0x897   : > { %3013 = vmatpush.bf16.msra.mxu3 %v4270_v61  ;;  %v1675_v9 = vadd.f32 %v1674_v6, %v1410_v63  ;;  %v1700_v10 = vpop.f32.mrf.mxu3  ;;  %2928 = vmatmul.bf16.vlgmr.msrb.gmra.mxu0 %v2084_v3  ;;  %v4278_v61 = vld [vmem:[%s4787_s0 + $0x328] sm:$0xff] }
 0x898   : > { %v1701_v12 = vadd.f32 %v1700_v10, %v1412_v1  ;;  %2954 = vmatmul.bf16.vlgmr.msra.gmra.mxu1 %v2086_v5  ;;  %2976 = vmatpush.bf16.msra.mxu0 %v4244_v2  ;;  %v1663_v13 = vpop.f32.mrf.mxu0  ;;  %v4287_v2 = vld [vmem:[%s4787_s0 + $0x370] sm:$0xff]  ;;  %v4277_v5 = vld [vmem:[%s4787_s0 + $0x320] sm:$0xff]  ;;  %v4286_v10 = vld [vmem:[%s4787_s0 + $0x368] sm:$0xff] }
 0x899   : > { %v1813_v15 = vmax.f32 %v1675_v9, 0.0  ;;  %3002 = vmatpush.bf16.msrb.mxu1 %v4260_v4  ;;  %v1689_v16 = vpop.f32.mrf.mxu1  ;;  %v4303_v4 = vld [vmem:[%s4787_s0 + $0x3f0] sm:$0xff] }
 0x89a   : > { %v1815_v18 = vmax.f32 %v1701_v12, 0.0  ;;  %2988 = vmatpush.bf16.msrb.mxu2 %v4253_v8  ;;  %v4293_v8 = vld [vmem:[%s4787_s0 + $0x3a0] sm:$0xff]  ;;  %v4302_v12 = vld [vmem:[%s4787_s0 + $0x3e8] sm:$0xff] }
 0x89b   : > { %v2085_v21 = vpack.c.bf16 %v1813_v15, %v1813_v15  ;;  %3014 = vmatpush.bf16.msra.mxu3 %v4269_v11  ;;  %v4292_v15 = vld [vmem:[%s4787_s0 + $0x398] sm:$0xff]  ;;  %v4285_v16 = vld [vmem:[%s4787_s0 + $0x360] sm:$0xff] }
 0x89c   : > { %v2087_v23 = vpack.c.bf16 %v1815_v18, %v1815_v18  ;;  %2977 = vmatpush.bf16.msra.mxu0 %v4243_v14  ;;  %v4276_v14 = vld [vmem:[%s4787_s0 + $0x318] sm:$0xff]  ;;  %v4275_v18 = vld [vmem:[%s4787_s0 + $0x310] sm:$0xff] }
 0x89d   : > { %3003 = vmatpush.bf16.msrb.mxu1 %v4259_v17  ;;  %2941 = vmatmul.bf16.vlgmr.msra.gmra.mxu2 %v2085_v21  ;;  %v4301_v17 = vld [vmem:[%s4787_s0 + $0x3e0] sm:$0xff] }
 0x89e   : > { %2967 = vmatmul.bf16.vlgmr.msrb.gmra.mxu3 %v2087_v23  ;;  %2989 = vmatpush.bf16.msrb.mxu2 %v4252_v19  ;;  %v1676_v7 = vpop.f32.mrf.mxu2  ;;  %v1417_v19 = vperm.slane %v5095_v20, 4  ;;  %v1419_v23 = vperm.slane %v5095_v20, 6 }
 0x89f   : > { %3015 = vmatpush.bf16.msra.mxu3 %v4268_v22  ;;  %v1702_v30 = vpop.f32.mrf.mxu3  ;;  %v4291_v22 = vld [vmem:[%s4787_s0 + $0x390] sm:$0xff]  ;;  %v4300_v7 = vld [vmem:[%s4787_s0 + $0x3d8] sm:$0xff] }
 0x8a0   : > { %2978 = vmatpush.bf16.msra.mxu0 %v4242_v24  ;;  %v1713_v33 = vpop.f32.mrf.mxu0 }
 0x8a1   : > { %3004 = vmatpush.bf16.msrb.mxu1 %v4258_v26  ;;  %v1714_v35 = vadd.f32 %v1713_v33, %v1413_v27  ;;  %v1739_v36 = vpop.f32.mrf.mxu1  ;;  %v4284_v26 = vld [vmem:[%s4787_s0 + $0x358] sm:$0xff] }
 0x8a2   : > { %v1740_v39 = vadd.f32 %v1739_v36, %v1415_v28  ;;  %2990 = vmatpush.bf16.msrb.mxu2 %v4251_v29  ;;  %v4274_v29 = vld [vmem:[%s4787_s0 + $0x308] sm:$0xff]  ;;  %v4299_v36 = vld [vmem:[%s4787_s0 + $0x3d0] sm:$0xff] }
 0x8a3   : > { %v1816_v41 = vmax.f32 %v1714_v35, 0.0  ;;  %3016 = vmatpush.bf16.msra.mxu3 %v4267_v31  ;;  %v4290_v31 = vld [vmem:[%s4787_s0 + $0x388] sm:$0xff]  ;;  %v1418_v35 = vperm.slane %v5095_v20, 5 }
 0x8a4   : > { %v1818_v44 = vmax.f32 %v1740_v39, 0.0  ;;  %2979 = vmatpush.bf16.msra.mxu0 %v4241_v34  ;;  %v4283_v34 = vld [vmem:[%s4787_s0 + $0x350] sm:$0xff] }
 0x8a5   : > { %v2088_v46 = vpack.c.bf16 %v1816_v41, %v1816_v41  ;;  %3005 = vmatpush.bf16.msrb.mxu1 %v4257_v37  ;;  %v1420_v37 = vperm.slane %v5095_v20, 7 }
 0x8a6   : > { %v2090_v48 = vpack.c.bf16 %v1818_v44, %v1818_v44  ;;  %2991 = vmatpush.bf16.msrb.mxu2 %v4250_v40  ;;  %v1726_v49 = vpop.f32.mrf.mxu2  ;;  %v4289_v40 = vld [vmem:[%s4787_s0 + $0x380] sm:$0xff] }
 0x8a7   : > { %3017 = vmatpush.bf16.msra.mxu3 %v4266_v42  ;;  %v1727_v52 = vadd.f32 %v1726_v49, %v1414_v43  ;;  %v1752_v53 = vpop.f32.mrf.mxu3  ;;  %2980 = vmatmul.bf16.vlgmr.msra.gmra.mxu0 %v2088_v46  ;;  %v4282_v43 = vld [vmem:[%s4787_s0 + $0x348] sm:$0xff] }
 0x8a8   : > { %3024 = vmatpush.bf16.msrb.mxu0 %v4280_v38  ;;  %v1753_v56 = vadd.f32 %v1752_v53, %v1416_v45  ;;  %3006 = vmatmul.bf16.vlgmr.msrb.gmra.mxu1 %v2090_v48  ;;  %v1715_v57 = vpop.f32.mrf.mxu0  ;;  %v4273_v38 = vld [vmem:[%s4787_s0 + $0x300] sm:$0xff]  ;;  %v4298_v45 = vld [vmem:[%s4787_s0 + $0x3c8] sm:$0xff] }
 0x8a9   : > { %3050 = vmatpush.bf16.msra.mxu1 %v4296_v25  ;;  %v1817_v59 = vmax.f32 %v1727_v52, 0.0  ;;  %v1741_v60 = vpop.f32.mrf.mxu1  ;;  %v4281_v48 = vld [vmem:[%s4787_s0 + $0x340] sm:$0xff] }
 0x8aa   : > { %v1819_v63 = vmax.f32 %v1753_v56, 0.0  ;;  %2992 = vmatpush.bf16.msrb.mxu2 %v4249_v51 }
 0x8ab   : > { %v2089_v1 = vpack.c.bf16 %v1817_v59, %v1817_v59  ;;  %3018 = vmatpush.bf16.msra.mxu3 %v4265_v54 }
 0x8ac   : > { %3025 = vmatpush.bf16.msrb.mxu0 %v4279_v47  ;;  %v2091_v3 = vpack.c.bf16 %v1819_v63, %v1819_v63 }
 0x8ad   : > { %3051 = vmatpush.bf16.msra.mxu1 %v4295_v50  ;;  %2993 = vmatmul.bf16.vlgmr.msrb.gmra.mxu2 %v2089_v1  ;;  %v4297_v50 = vld [vmem:[%s4787_s0 + $0x3c0] sm:$0xff] }
 0x8ae   : > { %3037 = vmatpush.bf16.msra.mxu2 %v4288_v55  ;;  %3019 = vmatmul.bf16.vlgmr.msra.gmra.mxu3 %v2091_v3  ;;  %v1728_v6 = vpop.f32.mrf.mxu2  ;;  %v4400_v3 = vld [vmem:[%s867_s16] ss:$0 sm:$0xff] }
 0x8af   : > { %3063 = vmatpush.bf16.msrb.mxu3 %v4304_v58  ;;  %v1754_v9 = vpop.f32.mrf.mxu3 }
 0x8b0   : > { %3026 = vmatpush.bf16.msrb.mxu0 %v4278_v61  ;;  %v1765_v11 = vpop.f32.mrf.mxu0 }
 0x8b1   : > { %3052 = vmatpush.bf16.msra.mxu1 %v4294_v0  ;;  %v1791_v13 = vpop.f32.mrf.mxu1  ;;  %v1766_v30 = vadd.f32 %v1765_v11, %v1417_v19 }
 0x8b2   : > { %3038 = vmatpush.bf16.msra.mxu2 %v4287_v2  ;;  %v1792_v33 = vadd.f32 %v1791_v13, %v1419_v23 }
 0x8b3   : > { %3064 = vmatpush.bf16.msrb.mxu3 %v4303_v4  ;;  %v1820_v39 = vmax.f32 %v1766_v30, 0.0 }
 0x8b4   : > { %3027 = vmatpush.bf16.msrb.mxu0 %v4277_v5  ;;  %v1822_v41 = vmax.f32 %v1792_v33, 0.0 }
 0x8b5   : > { %3053 = vmatpush.bf16.msra.mxu1 %v4293_v8  ;;  %v2092_v47 = vpack.c.bf16 %v1820_v39, %v1820_v39 }
 0x8b6   : > { %3039 = vmatpush.bf16.msra.mxu2 %v4286_v10  ;;  %v1778_v21 = vpop.f32.mrf.mxu2  ;;  %v2094_v20 = vpack.c.bf16 %v1822_v41, %v1822_v41 }
 0x8b7   : > { %3065 = vmatpush.bf16.msrb.mxu3 %v4302_v12  ;;  %v1804_v24 = vpop.f32.mrf.mxu3  ;;  %v1779_v44 = vadd.f32 %v1778_v21, %v1418_v35 }
 0x8b8   : > { %3028 = vmatpush.bf16.msrb.mxu0 %v4276_v14  ;;  %v1767_v27 = vpop.f32.mrf.mxu0  ;;  %v1805_v46 = vadd.f32 %v1804_v24, %v1420_v37 }
 0x8b9   : > { %3054 = vmatpush.bf16.msra.mxu1 %v4292_v15  ;;  %v1793_v28 = vpop.f32.mrf.mxu1  ;;  %v1821_v49 = vmax.f32 %v1779_v44, 0.0 }
 0x8ba   : > { %3040 = vmatpush.bf16.msra.mxu2 %v4285_v16  ;;  %v1823_v51 = vmax.f32 %v1805_v46, 0.0 }
 0x8bb   : > { %3066 = vmatpush.bf16.msrb.mxu3 %v4301_v17  ;;  %v2093_v52 = vpack.c.bf16 %v1821_v49, %v1821_v49 }
 0x8bc   : > { %3029 = vmatpush.bf16.msrb.mxu0 %v4275_v18  ;;  %v2095_v53 = vpack.c.bf16 %v1823_v51, %v1823_v51 }
 0x8bd   : > { %3055 = vmatpush.bf16.msra.mxu1 %v4291_v22 }
 0x8be   : > { %3041 = vmatpush.bf16.msra.mxu2 %v4284_v26  ;;  %v1780_v25 = vpop.f32.mrf.mxu2 }
 0x8bf   : > { %3067 = vmatpush.bf16.msrb.mxu3 %v4300_v7  ;;  %v1806_v42 = vpop.f32.mrf.mxu3 }
 0x8c0   : > { %3030 = vmatpush.bf16.msrb.mxu0 %v4274_v29 }
 0x8c1   : > { %3056 = vmatpush.bf16.msra.mxu1 %v4290_v31 }
 0x8c2   : > { %3042 = vmatpush.bf16.msra.mxu2 %v4283_v34 }
 0x8c3   : > { %3068 = vmatpush.bf16.msrb.mxu3 %v4299_v36 }
 0x8c4   : > { %3031 = vmatpush.bf16.msrb.mxu0 %v4273_v38 }
 0x8c5   : > { %3057 = vmatpush.bf16.msra.mxu1 %v4289_v40 }
 0x8c6   : > { %3043 = vmatpush.bf16.msra.mxu2 %v4282_v43 }
 0x8c7   : > { %3069 = vmatpush.bf16.msrb.mxu3 %v4298_v45  ;;  %3032 = vmatmul.bf16.vlgmr.msrb.gmra.mxu0 %v2092_v47 }
 0x8c8   : > { %3058 = vmatmul.bf16.vlgmr.msra.gmra.mxu1 %v2094_v20 }
 0x8ca   : > { %3044 = vmatpush.bf16.msra.mxu2 %v4281_v48 }
 0x8cb   : > { %3070 = vmatpush.bf16.msrb.mxu3 %v4297_v50 }
 0x8cd   : > { %3045 = vmatmul.bf16.vlgmr.msra.gmra.mxu2 %v2093_v52 }
 0x8ce   : > { %3071 = vmatmul.bf16.vlgmr.msrb.gmra.mxu3 %v2095_v53 }
 0x904   : > { %v2877_v54 = vpop.f32.mrf.mxu0 }
 0x905   : > { %v2903_v55 = vpop.f32.mrf.mxu1  ;;  %v2878_v6 = vadd.f32 %v4400_v3, %v2877_v54 }
 0x90c   : > { %v2879_v56 = vpop.f32.mrf.mxu0 }
 0x90d   : > { %v2905_v57 = vpop.f32.mrf.mxu1  ;;  %v4401_v56 = vld [vmem:[%s870_s27] ss:$0 sm:$0xff] }
 0x910   : > { %v2890_v58 = vpop.f32.mrf.mxu2 }
 0x911   : > { %v2916_v59 = vpop.f32.mrf.mxu3  ;;  %v2891_v10 = vadd.f32 %v2890_v58, %v2878_v6  ;;  %v4402_v58 = vld [vmem:[%s873_s20] ss:$0 sm:$0xff]  ;;  %s5329_s20 = sld [smem:[#allocation31_spill]] (!%p4123_p1) }
 0x913   : > { %v2904_v13 = vadd.f32 %v2903_v55, %v2891_v10 }
 0x914   : > { %v2929_v60 = vpop.f32.mrf.mxu0 }
 0x915   : > { %v2955_v61 = vpop.f32.mrf.mxu1  ;;  %v2917_v16 = vadd.f32 %v2916_v59, %v2904_v13 }
 0x917   : > { %v2930_v19 = vadd.f32 %v2929_v60, %v2917_v16 }
 0x918   : > { %v2892_v63 = vpop.f32.mrf.mxu2 }
 0x919   : > { %v2918_v0 = vpop.f32.mrf.mxu3 }
 0x91c   : > { %v2931_v1 = vpop.f32.mrf.mxu0 }
 0x91d   : > { %v2957_v2 = vpop.f32.mrf.mxu1 }
 0x920   : > { %v2942_v4 = vpop.f32.mrf.mxu2 }
 0x921   : > { %v2968_v5 = vpop.f32.mrf.mxu3  ;;  %v2943_v21 = vadd.f32 %v2942_v4, %v2930_v19 }
 0x923   : > { %v2956_v22 = vadd.f32 %v2955_v61, %v2943_v21 }
 0x924   : > { %v2981_v8 = vpop.f32.mrf.mxu0 }
 0x925   : > { %v3007_v9 = vpop.f32.mrf.mxu1  ;;  %v2969_v26 = vadd.f32 %v2968_v5, %v2956_v22 }
 0x927   : > { %v2982_v27 = vadd.f32 %v2981_v8, %v2969_v26 }
 0x928   : > { %v2944_v11 = vpop.f32.mrf.mxu2 }
 0x929   : > { %v2970_v12 = vpop.f32.mrf.mxu3 }
 0x92c   : > { %v2983_v14 = vpop.f32.mrf.mxu0 }
 0x92d   : > { %v3009_v15 = vpop.f32.mrf.mxu1 }
 0x930   : > { %v2994_v17 = vpop.f32.mrf.mxu2 }
 0x931   : > { %v3020_v18 = vpop.f32.mrf.mxu3  ;;  %v2995_v28 = vadd.f32 %v2994_v17, %v2982_v27 }
 0x933   : > { %v3008_v30 = vadd.f32 %v3007_v9, %v2995_v28 }
 0x935   : > { %v3021_v33 = vadd.f32 %v3020_v18, %v3008_v30 }
 0x938   : > { %v2996_v23 = vpop.f32.mrf.mxu2 }
 0x939   : > { %v3022_v24 = vpop.f32.mrf.mxu3 }
 0x944   : > { %v3033_v7 = vpop.f32.mrf.mxu0 }
 0x945   : > { %v3059_v29 = vpop.f32.mrf.mxu1  ;;  %v3034_v35 = vadd.f32 %v3033_v7, %v3021_v33 }
 0x94c   : > { %v3035_v31 = vpop.f32.mrf.mxu0 }
 0x94d   : > { %v3061_v34 = vpop.f32.mrf.mxu1 }
 0x950   : > { %v3046_v36 = vpop.f32.mrf.mxu2 }
 0x951   : > { %v3047_v37 = vadd.f32 %v3046_v36, %v3034_v35  ;;  %v3072_v38 = vpop.f32.mrf.mxu3 }
 0x953   : > { %v3060_v39 = vadd.f32 %v3059_v29, %v3047_v37 }
 0x955   : > { %v3073_v25 = vadd.f32 %v3072_v38, %v3060_v39 }
 0x957   : > { %v3076_v40 = vadd.f32 %v3073_v25, %v4933_v32 }
 0x958   : > { %v3048_v41 = vpop.f32.mrf.mxu2 }
 0x959   : > { %v3074_v42 = vpop.f32.mrf.mxu3  ;;  %v3079_v43 = vsel %vm904_vm1, %v3076_v40, 0.0 }
 0x95a   : > { %3080 = vadd.xlane.f32.xlu2 %v3079_v43 }
 0x9cd   : > { %v3081_v44 = vpop.xlane.xlu2 %3080 }
 0x9ce   : > { %v3082_v45 = vmul.f32 %v3081_v44, %v4857_v62 }
 0x9d0   : > { %v3083_v46 = vsub.f32 %v3076_v40, %v3082_v45 }
 0x9d2   : > { %v3084_v47 = vmul.f32 %v3083_v46, %v3083_v46 }
 0x9d4   : > { %v3085_v20 = vsel %vm904_vm1, %v3084_v47, 0.0 }
 0x9d5   : > { %3086 = vadd.xlane.f32.xlu0 %v3085_v20 }
 0xa48   : > { %v3087_v48 = vpop.xlane.xlu0 %3086 }
 0xa49   : > { %v3088_v49 = vmul.f32 %v3087_v48, %v4857_v62 }
 0xa4b   : > { %v3089_v50 = vadd.f32 1e-05, %v3088_v49 }
 0xa4d   : > { %4425 = vrsqrt.f32 %v3089_v50  ;;  %vm3096_vm14 = vweird.f32 %v3089_v50 }
 0xa53   : > { %v4426_v32 = vpop.eup %4425 }
 0xa54   : > { %v3091_v51 = vmul.f32 %v4426_v32, %v3089_v50  ;;  %vm3097_vm13 = vweird.f32 %v4426_v32 }
 0xa55   : > { %vm3098_vm15 = vmor %vm3096_vm14, %vm3097_vm13 }
 0xa56   : > { %v3092_v52 = vmul.f32 %v4426_v32, %v3091_v51 }
 0xa58   : > { %v3093_v53 = vmul.f32 0.5, %v3092_v52 }
 0xa5a   : > { %v3094_v54 = vsub.f32 1.5, %v3093_v53 }
 0xa5c   : > { %v3095_v55 = vmul.f32 %v4426_v32, %v3094_v54 }
 0xa5e   : > { %v3099_v57 = vsel %vm3098_vm15, %v4426_v32, %v3095_v55 }
 0xa5f   : > { %v3100_v59 = vmul.f32 %v3099_v57, %v3083_v46 }
 0xa61   : > { %v3104_v60 = vmul.f32 %v4401_v56, %v3100_v59  ;;  %3113 = sbr.rel (%p4123_p1) target bundleno = 3066 (0xbfa), region = 108 }
 0xa63   : > { %v3108_v61 = vadd.f32 %v4402_v58, %v3104_v60 }
 0xa65   : > { %3109 = vst.msk [vmem:[#allocation2] sm:$0xff] %vm904_vm1, %v3108_v61 }
 0xa66   : > { %v3116_v63 = vsel %vm904_vm1, %v3108_v61, 0.0  ;;  %v4306_v5 = vld [vmem:[%s5329_s20 + $0x8] sm:$0xff]  ;;  %v4305_v6 = vld [vmem:[%s5329_s20] sm:$0xff] }
 0xa67   : > { %3117 = vadd.xlane.f32.xlu0 %v3116_v63  ;;  %3176 = vmatpush.bf16.msra.mxu0 %v4306_v5  ;;  %v4427_v17 = vld [vmem:[%s5330_s21] ss:$0 sm:$0xff] }
 0xa68   : > { %v4429_v24 = vld [vmem:[%s5332_s22] ss:$0 sm:$0xff] }
 0xa6b   : > { %3177 = vmatpush.bf16.msra.mxu0 %v4305_v6 }
 0xada   : > { %v3118_v0 = vpop.xlane.xlu0 %3117 }
 0xadb   : > { %v3119_v1 = vmul.f32 %v3118_v0, %v4857_v62 }
 0xadd   : > { %v3120_v2 = vsub.f32 %v3108_v61, %v3119_v1 }
 0xadf   : > { %v3121_v3 = vmul.f32 %v3120_v2, %v3120_v2 }
 0xae1   : > { %v3122_v4 = vsel %vm904_vm1, %v3121_v3, 0.0 }
 0xae2   : > { %3123 = vadd.xlane.f32.xlu0 %v3122_v4 }
 0xb55   : > { %v3124_v8 = vpop.xlane.xlu0 %3123 }
 0xb56   : > { %v3125_v9 = vmul.f32 %v3124_v8, %v4857_v62  ;;  %v4428_v62 = vld [vmem:[%s5331_s30] ss:$0 sm:$0xff] }
 0xb58   : > { %v3126_v10 = vadd.f32 1e-05, %v3125_v9 }
 0xb5a   : > { %4430 = vrsqrt.f32 %v3126_v10  ;;  %vm3133_vm3 = vweird.f32 %v3126_v10 }
 0xb60   : > { %v4431_v11 = vpop.eup %4430 }
 0xb61   : > { %v3128_v12 = vmul.f32 %v4431_v11, %v3126_v10  ;;  %vm3134_vm0 = vweird.f32 %v4431_v11 }
 0xb62   : > { %vm3135_vm4 = vmor %vm3133_vm3, %vm3134_vm0 }
 0xb63   : > { %v3129_v13 = vmul.f32 %v4431_v11, %v3128_v12 }
 0xb65   : > { %v3130_v14 = vmul.f32 0.5, %v3129_v13 }
 0xb67   : > { %v3131_v15 = vsub.f32 1.5, %v3130_v14 }
 0xb69   : > { %v3132_v16 = vmul.f32 %v4431_v11, %v3131_v15 }
 0xb6b   : > { %v3136_v18 = vsel %vm3135_vm4, %v4431_v11, %v3132_v16 }
 0xb6c   : > { %v3137_v19 = vmul.f32 %v3136_v18, %v3120_v2 }
 0xb6e   : > { %v3141_v21 = vmul.f32 %v4427_v17, %v3137_v19 }
 0xb70   : > { %v3145_v22 = vadd.f32 %v4428_v62, %v3141_v21 }
 0xb72   : > { %v3150_v23 = vpack.c.bf16 %v3145_v22, %v3145_v22 }
 0xb74   : > { %4132 = vmatmul.msk.bf16.vlgmr.msra.gmra.mxu0 %vm904_vm1, %v3150_v23 }
 0xbf1   : > { %v3179_v26 = vpop.f32.mrf.mxu0 }
 0xbf2   : > { %v3180_v27 = vadd.f32 %v4429_v24, %v3179_v26 }
 0xbf4   : > { %3183 = vst [vmem:[%s815_s4] sm:$0xff] %v3180_v27 }
 0xbf9   : > { %v3181_v7 = vpop.f32.mrf.mxu0 }
 0xbfa PF: > { %s5333_s15 = sld [smem:[#allocation10_spill]]  ;;  %s3197_s1 = sshll.u32 %s815_s4, 4  ;;  %s3198_s1 = int_to_ptr.vmem [resolvable:$true] %s3197_s1 }
 0xbfb   : > { %s5334_s16 = sld [smem:[#allocation7_spill]] }
 0xbfc   : > { %s5336_s12 = sld [smem:[#allocation33_spill]] }
 0xc00   : > { %s4134_s2 = sshll.u32 %s5333_s15, 3 }
 0xc01   : > { %s5337_s14 = sand.u32 1, %s5334_s16  }
 0xc02   : > { %s3195_s3 = scalar_lea.hbm %s5336_s12, %s4134_s2  ;;  %s3185_s26 = scalar_lea.sflag [#allocation4], %s5337_s14 }
 0xc03   : > { %s3199_s27 = sshll.u32 %s3195_s3, 4  ;;  %s4452_s23 = scalar_lea.hbm %s5336_s12, 16  ;;  %s3200_s27 = int_to_ptr.hbm [resolvable:$true] %s3199_s27 }
 0xc04   : > { %s4446_s10 = sshra.s32 %s3200_s27, 4  ;;  %s4447_s10 = int_to_ptr.hbm [resolvable:$true] %s4446_s10 }
 0xc05   : > { %s4448_s17 = scalar_lea.hbm %s4447_s10, 8  ;;  %p4453_p6 = scmp.lt.s32.totalorder %s4447_s10, %s5336_s12 }
 0xc06   : > { %p4449_p2 = scmp.ne.s32.totalorder %s4447_s10, %s4448_s17  ;;  %p4454_p7 = scmp.lt.s32.totalorder %s4452_s23, %s4448_s17 }
 0xc08   : > { %p4450_p4 = pnand %p4449_p2, %p4697_p3  ;;  %p4455_p8 = por %p4454_p7, %p4453_p6 }
 0xc0a   : > { %p4451_p5 = pneg %p4450_p4 }
 0xc0c   : > { %p4456_p10 = pnand %p4455_p8, %p4451_p5 }
 0xc0e   : > { %4459 = shalt.err (!%p4456_p10)
}
 0xc0f   : > { %4307 = dma.vmem_to_hbm [thread:$0]  (%p4697_p3), %s3198_s1, 128, %s3200_s27, %s3185_s26  }
 0xc10 PF: > { %s5338_s25 = sld [smem:[#allocation13_spill]] }
 0xc11   : > { %s5339_s4 = sld [smem:[#allocation6_spill]] }
 0xc16   : > { %p4313_p11 = scmp.ge.s32.totalorder %s5338_s25, 2 }
 0xc17   : > { %s3211_s22 = sand.u32 1, %s5339_s4  }
 0xc18   : > { %p4310_p12 = pnand %p4313_p11, %p4707_p9  ;;  %s3212_s15 = scalar_lea.sflag [#allocation4], %s3211_s22 }
 0xc1a   : > { %p4311_p13 = pneg %p4310_p12 }
 0xc1c   : > { %4493 = dma.done.wait (%p4311_p13), %s3212_s15, 128  }
 0xc1d   : > { %4495 = vsyncadd (%p4311_p13), %s3212_s15, 4294967168  ;;  %s33_s26 = sadd.s32 1, %s5338_s25   ;;  %s5341_s1 = sld [smem:[#allocation7_spill]] }
 0xc1e   : > { %p30_p0 = scmp.ge.s32.totalorder %s33_s26, 6   ;;  %s5342_s22 = sld [smem:[#allocation8_spill]] }
 0xc1f   : > { %s5343_s23 = sld [smem:[#allocation18_spill]] }
 0xc20   : > { %s5344_s24 = sld [smem:[#allocation11_spill]]  ;;  %32 = sbr.rel (!%p30_p0) target bundleno = 20 (0x14), region = 188 }
 0xc21   : > { %s5345_s2 = sld [smem:[#allocation12_spill]] }
 0xc22   : > { %s5346_s25 = sld [smem:[#allocation14_spill]] }
 0xc23   : > { %s5347_s3 = sld [smem:[#allocation16_spill]] }
 0xc25   :  { %3218 = vsyncpa [#allocation4], 1 }
 0xc26   :  { %3220 = vsyncpa [#allocation4 + $0x1], 1 }

</bundles_post_ra>
